<compile_context>
chip_gen: v7x
topology: tpu7x:2x2x1
jax: 0.10.0
libtpu: 0.0.40
codegen_flags: <defaults>
</compile_context>

<pallas_src>
import functools

import jax
import jax.numpy as jnp
import numpy as np
from jax.experimental import pallas as pl
from jax.experimental.pallas import tpu as pltpu


def _round_up(x, m):
    return (x + m - 1) // m * m


def _grouped_conv_kernel(xm_ref, xh_ref, w_ref, b_ref, o_ref, xc_ref, acc_ref,
                         *, TH, W_k, Wo, KH, KW, Cin, Cout):
    """One (batch, row-strip) grid step.

    xm_ref : (1, TH,   Wp, Cin)       main rows of the padded NHWC input strip
    xh_ref : (1, KH-1, Wp, Cin)       halo rows just below the main rows
    w_ref  : (KH, KW*Cin, Cout)       block-diagonal grouped weight, kw in K
    b_ref  : (1, Cout)                bias (f32)
    o_ref  : (1, TH, Wo, Cout)        output strip
    xc_ref : ((TH+KH-1)*W_k, KW*Cin)  scratch: kw-stacked strip (im2col-lite)
    acc_ref: (TH*W_k, Cout) f32       accumulator scratch
    """
    halo = KH - 1

    # Stack the KW taps along the lane/contraction axis, once per strip.
    for kw in range(KW):
        cols = slice(kw * Cin, (kw + 1) * Cin)
        xc_ref[0:TH * W_k, cols] = (
            xm_ref[0, :, kw:kw + W_k, :].reshape(TH * W_k, Cin))
        xc_ref[TH * W_k:(TH + halo) * W_k, cols] = (
            xh_ref[0, :, kw:kw + W_k, :].reshape(halo * W_k, Cin))

    # KH lane-dense MXU matmuls with K = KW*Cin, f32 accumulation.
    # The kh row-window offset (kh*W_k) is a multiple of 8 => free aligned view.
    for kh in range(KH):
        lhs = xc_ref[kh * W_k:kh * W_k + TH * W_k, :]
        part = jnp.dot(lhs, w_ref[kh], preferred_element_type=jnp.float32)
        if kh == 0:
            acc_ref[...] = part      # init from first tap - no zero-fill pass
        else:
            acc_ref[...] += part

    out = (acc_ref[...] + b_ref[...]).reshape(TH, W_k, Cout)
    o_ref[...] = out[:, :Wo, :].astype(o_ref.dtype).reshape(1, TH, Wo, Cout)


def grouped_conv2d(x_nchw, w, b, *, groups, stride=1, padding=1,
                   block_h=None, compute_dtype=jnp.float32):
    """Matches nn.Conv2d(Cin, Cout, K, stride=1, padding=p, groups=G, bias=True).

    x_nchw: (N, Cin, H, W), w: (Cout, Cin//G, KH, KW), b: (Cout,). Returns NCHW.
    """
    assert stride == 1, "only stride=1 is implemented (matches the module)"
    N, Cin, H, W = x_nchw.shape
    Cout, cin_g, KH, KW = w.shape
    assert Cin % groups == 0 and Cout % groups == 0 and cin_g == Cin // groups
    assert KH >= 2, "halo-strip tiling assumes kernel height >= 2"
    cout_g = Cout // groups

    Ho = H + 2 * padding - KH + 1
    Wo = W + 2 * padding - KW + 1

    # --- output row-strip height (prefer a divisor of Ho, multiple of KH-1) ---
    if block_h is None:
        block_h = next((t for t in (32, 28, 24, 20, 16, 12, 10, 8, 6, 4, 2)
                        if Ho % t == 0), 16)
    TH = int(block_h)
    assert TH % (KH - 1) == 0, "strip height must be a multiple of KH-1"
    Ho_pad = _round_up(Ho, TH)
    n_strips = Ho_pad // TH

    # --- layout-friendly padded spatial extents ---
    W_k = _round_up(Wo, 8)        # multiple of 8 => free (rows,W,C) reshapes
    Hp = Ho_pad + KH - 1
    Wp = W_k + KW - 1

    # --- dense block-diagonal weight, kw folded into the contraction dim ---
    # wd[kh, kw, g*cin_g + ci, h*cout_g + co] = (g == h) * w[h*cout_g + co, ci, kh, kw]
    w_g = w.reshape(groups, cout_g, cin_g, KH, KW).astype(jnp.float32)
    eye = jnp.eye(groups, dtype=jnp.float32)
    wd = jnp.einsum('gh,hoiyx->yxgiho', eye, w_g)          # (KH,KW,G,cin_g,G,cout_g)
    w_k = wd.reshape(KH, KW * Cin, Cout).astype(compute_dtype)
    w_k = w_k.reshape(KH, KW * Cin, Cout)
    b2 = b.reshape(1, Cout).astype(jnp.float32)

    # --- NCHW -> NHWC, zero pad (conv padding + alignment padding) ---
    x_nhwc = jnp.transpose(x_nchw, (0, 2, 3, 1)).astype(compute_dtype)
    x_pad = jnp.pad(x_nhwc, ((0, 0),
                             (padding, Hp - H - padding),
                             (padding, Wp - W - padding),
                             (0, 0)))

    kernel = functools.partial(_grouped_conv_kernel, TH=TH, W_k=W_k, Wo=Wo,
                               KH=KH, KW=KW, Cin=Cin, Cout=Cout)

    flops = 2 * N * n_strips * KH * (TH * W_k) * (KW * Cin) * Cout
    bytes_accessed = (x_pad.size * x_pad.dtype.itemsize
                      + N * Ho_pad * Wo * Cout * x_nchw.dtype.itemsize
                      + w_k.size * w_k.dtype.itemsize)

    out_nhwc = pl.pallas_call(
        kernel,
        out_shape=jax.ShapeDtypeStruct((N, Ho_pad, Wo, Cout), x_nchw.dtype),
        grid_spec=pltpu.PrefetchScalarGridSpec(
            num_scalar_prefetch=0,
            grid=(N, n_strips),
            in_specs=[
                # main TH rows of the strip
                pl.BlockSpec((1, TH, Wp, Cin), lambda n, s: (n, s, 0, 0)),
                # KH-1 halo rows just below (block index * (KH-1) == (s+1)*TH)
                pl.BlockSpec((1, KH - 1, Wp, Cin),
                             lambda n, s: (n, (s + 1) * (TH // (KH - 1)), 0, 0)),
                # weights + bias stay resident in VMEM (constant index map)
                pl.BlockSpec((KH, KW * Cin, Cout), lambda n, s: (0, 0, 0)),
                pl.BlockSpec((1, Cout), lambda n, s: (0, 0)),
            ],
            out_specs=pl.BlockSpec((1, TH, Wo, Cout), lambda n, s: (n, s, 0, 0)),
            scratch_shapes=[
                pltpu.VMEM(((TH + KH - 1) * W_k, KW * Cin), compute_dtype),
                pltpu.VMEM((TH * W_k, Cout), jnp.float32),
            ]),
        compiler_params=pltpu.CompilerParams(
            dimension_semantics=("parallel", "parallel")),
        cost_estimate=pl.CostEstimate(flops=flops, transcendentals=0,
                                      bytes_accessed=bytes_accessed),
    )(x_pad, x_pad, w_k, b2)

    out_nhwc = out_nhwc[:, :Ho, :, :]            # drop pad rows if Ho % TH != 0
    return jnp.transpose(out_nhwc, (0, 3, 1, 2))  # NHWC -> NCHW (torch.cat order)


if __name__ == "__main__":
    N, Cin, Cout, G, K = 2, 64, 128, 16, 3
    H = W = 16   # small demo spatial size; the module was exercised at 100x100

    key = jax.random.PRNGKey(0)
    k_x, k_w, k_b = jax.random.split(key, 3)
    x = jax.random.normal(k_x, (N, Cin, H, W), jnp.float32)
    w = jax.random.normal(k_w, (Cout, Cin // G, K, K), jnp.float32) * 0.1
    b = jax.random.normal(k_b, (Cout,), jnp.float32) * 0.1

    # Reference: XLA grouped conv with identical semantics to the PyTorch module.
    ref = jax.lax.conv_general_dilated(
        x, w, window_strides=(1, 1), padding=((1, 1), (1, 1)),
        dimension_numbers=('NCHW', 'OIHW', 'NCHW'), feature_group_count=G)
    ref = ref + b[None, :, None, None]

    # f32-operand path (accuracy path).
    run_f32 = jax.jit(functools.partial(grouped_conv2d, groups=G, stride=1,
                                        padding=1, block_h=8,
                                        compute_dtype=jnp.float32))
    out = jax.block_until_ready(run_f32(x, w, b))
    assert out.shape == (N, Cout, H, W), out.shape
    err = float(np.max(np.abs(np.asarray(out) - np.asarray(ref))))
    assert err < 1e-3, f"f32 max abs err {err}"

    # bf16-operand path (f32 accumulation) - the fast path on bf16-native MXUs.
    run_bf16 = jax.jit(functools.partial(grouped_conv2d, groups=G, stride=1,
                                         padding=1, block_h=8,
                                         compute_dtype=jnp.bfloat16))
    out_bf16 = jax.block_until_ready(run_bf16(x, w, b))
    err_bf16 = float(np.max(np.abs(np.asarray(out_bf16) - np.asarray(ref))))
    assert err_bf16 < 1.5e-1, f"bf16 max abs err {err_bf16}"

    print("KERNEL_OK")
</pallas_src>

<mosaic_0001>
module attributes {stable_mosaic.version = 11 : i64} {
  func.func @_grouped_conv_kernel(%arg0: i32, %arg1: i32, %arg2: memref<1x8x18x64xf32, #tpu.memory_space<vmem>>, %arg3: memref<1x2x18x64xf32, #tpu.memory_space<vmem>>, %arg4: memref<3x192x128xf32, #tpu.memory_space<vmem>>, %arg5: memref<1x128xf32, #tpu.memory_space<vmem>>, %arg6: memref<1x8x16x128xf32, #tpu.memory_space<vmem>>, %arg7: memref<160x192xf32, #tpu.memory_space<vmem>>, %arg8: memref<128x128xf32, #tpu.memory_space<vmem>>) attributes {dimension_semantics = [#tpu.dimension_semantics<parallel>, #tpu.dimension_semantics<parallel>], iteration_bounds = array<i64: 2, 2>, scalar_prefetch = 0 : i64, scratch_operands = 2 : i64, tpu.core_type = #tpu.core_type<tc>, window_params = [{transform_indices = @transform_0, window_bounds = array<i64: 1, 8, 18, 64>}, {transform_indices = @transform_1, window_bounds = array<i64: 1, 2, 18, 64>}, {pipeline_mode = #tpu.pipeline_mode<synchronous>, transform_indices = @transform_2, window_bounds = array<i64: 3, 192, 128>}, {pipeline_mode = #tpu.pipeline_mode<synchronous>, transform_indices = @transform_3, window_bounds = array<i64: 1, 128>}, {transform_indices = @transform_4, window_bounds = array<i64: 1, 8, 16, 128>}]} {
    %c0 = arith.constant 0 : index
    %c0_0 = arith.constant 0 : index
    %c0_1 = arith.constant 0 : index
    %c0_2 = arith.constant 0 : index
    %0 = vector.load %arg2[%c0, %c0_0, %c0_1, %c0_2] : memref<1x8x18x64xf32, #tpu.memory_space<vmem>>, vector<1x8x16x64xf32>
    %1 = vector.shape_cast %0 : vector<1x8x16x64xf32> to vector<8x16x64xf32>
    %2 = vector.shape_cast %1 : vector<8x16x64xf32> to vector<128x64xf32>
    %c0_3 = arith.constant 0 : index
    %c0_4 = arith.constant 0 : index
    %3 = vector.load %arg7[%c0_3, %c0_4] : memref<160x192xf32, #tpu.memory_space<vmem>>, vector<128x64xf32>
    tpu.vector_store %arg7[%c0_3, %c0_4], %2 {strides = array<i32>} : memref<160x192xf32, #tpu.memory_space<vmem>>, vector<128x64xf32>,
    %c0_5 = arith.constant 0 : index
    %c0_6 = arith.constant 0 : index
    %c0_7 = arith.constant 0 : index
    %c0_8 = arith.constant 0 : index
    %4 = vector.load %arg3[%c0_5, %c0_6, %c0_7, %c0_8] : memref<1x2x18x64xf32, #tpu.memory_space<vmem>>, vector<1x2x16x64xf32>
    %5 = vector.shape_cast %4 : vector<1x2x16x64xf32> to vector<2x16x64xf32>
    %6 = vector.shape_cast %5 : vector<2x16x64xf32> to vector<32x64xf32>
    %c128 = arith.constant 128 : index
    %c0_9 = arith.constant 0 : index
    %7 = vector.load %arg7[%c128, %c0_9] : memref<160x192xf32, #tpu.memory_space<vmem>>, vector<32x64xf32>
    tpu.vector_store %arg7[%c128, %c0_9], %6 {strides = array<i32>} : memref<160x192xf32, #tpu.memory_space<vmem>>, vector<32x64xf32>,
    %c0_10 = arith.constant 0 : index
    %c0_11 = arith.constant 0 : index
    %c1 = arith.constant 1 : index
    %c0_12 = arith.constant 0 : index
    %8 = vector.load %arg2[%c0_10, %c0_11, %c1, %c0_12] : memref<1x8x18x64xf32, #tpu.memory_space<vmem>>, vector<1x8x16x64xf32>
    %9 = vector.shape_cast %8 : vector<1x8x16x64xf32> to vector<8x16x64xf32>
    %10 = vector.shape_cast %9 : vector<8x16x64xf32> to vector<128x64xf32>
    %c0_13 = arith.constant 0 : index
    %c64 = arith.constant 64 : index
    %11 = vector.load %arg7[%c0_13, %c64] : memref<160x192xf32, #tpu.memory_space<vmem>>, vector<128x64xf32>
    tpu.vector_store %arg7[%c0_13, %c64], %10 {strides = array<i32>} : memref<160x192xf32, #tpu.memory_space<vmem>>, vector<128x64xf32>,
    %c0_14 = arith.constant 0 : index
    %c0_15 = arith.constant 0 : index
    %c1_16 = arith.constant 1 : index
    %c0_17 = arith.constant 0 : index
    %12 = vector.load %arg3[%c0_14, %c0_15, %c1_16, %c0_17] : memref<1x2x18x64xf32, #tpu.memory_space<vmem>>, vector<1x2x16x64xf32>
    %13 = vector.shape_cast %12 : vector<1x2x16x64xf32> to vector<2x16x64xf32>
    %14 = vector.shape_cast %13 : vector<2x16x64xf32> to vector<32x64xf32>
    %c128_18 = arith.constant 128 : index
    %c64_19 = arith.constant 64 : index
    %15 = vector.load %arg7[%c128_18, %c64_19] : memref<160x192xf32, #tpu.memory_space<vmem>>, vector<32x64xf32>
    tpu.vector_store %arg7[%c128_18, %c64_19], %14 {strides = array<i32>} : memref<160x192xf32, #tpu.memory_space<vmem>>, vector<32x64xf32>,
    %c0_20 = arith.constant 0 : index
    %c0_21 = arith.constant 0 : index
    %c2 = arith.constant 2 : index
    %c0_22 = arith.constant 0 : index
    %16 = vector.load %arg2[%c0_20, %c0_21, %c2, %c0_22] : memref<1x8x18x64xf32, #tpu.memory_space<vmem>>, vector<1x8x16x64xf32>
    %17 = vector.shape_cast %16 : vector<1x8x16x64xf32> to vector<8x16x64xf32>
    %18 = vector.shape_cast %17 : vector<8x16x64xf32> to vector<128x64xf32>
    %c0_23 = arith.constant 0 : index
    %c128_24 = arith.constant 128 : index
    %19 = vector.load %arg7[%c0_23, %c128_24] : memref<160x192xf32, #tpu.memory_space<vmem>>, vector<128x64xf32>
    tpu.vector_store %arg7[%c0_23, %c128_24], %18 {strides = array<i32>} : memref<160x192xf32, #tpu.memory_space<vmem>>, vector<128x64xf32>,
    %c0_25 = arith.constant 0 : index
    %c0_26 = arith.constant 0 : index
    %c2_27 = arith.constant 2 : index
    %c0_28 = arith.constant 0 : index
    %20 = vector.load %arg3[%c0_25, %c0_26, %c2_27, %c0_28] : memref<1x2x18x64xf32, #tpu.memory_space<vmem>>, vector<1x2x16x64xf32>
    %21 = vector.shape_cast %20 : vector<1x2x16x64xf32> to vector<2x16x64xf32>
    %22 = vector.shape_cast %21 : vector<2x16x64xf32> to vector<32x64xf32>
    %c128_29 = arith.constant 128 : index
    %c128_30 = arith.constant 128 : index
    %23 = vector.load %arg7[%c128_29, %c128_30] : memref<160x192xf32, #tpu.memory_space<vmem>>, vector<32x64xf32>
    tpu.vector_store %arg7[%c128_29, %c128_30], %22 {strides = array<i32>} : memref<160x192xf32, #tpu.memory_space<vmem>>, vector<32x64xf32>,
    %c0_31 = arith.constant 0 : index
    %c0_32 = arith.constant 0 : index
    %24 = vector.load %arg7[%c0_31, %c0_32] : memref<160x192xf32, #tpu.memory_space<vmem>>, vector<128x192xf32>
    %c0_33 = arith.constant 0 : index
    %c0_34 = arith.constant 0 : index
    %c0_35 = arith.constant 0 : index
    %25 = vector.load %arg4[%c0_33, %c0_34, %c0_35] : memref<3x192x128xf32, #tpu.memory_space<vmem>>, vector<1x192x128xf32>
    %26 = vector.shape_cast %25 : vector<1x192x128xf32> to vector<192x128xf32>
    %cst = arith.constant dense<0.000000e+00> : vector<128x128xf32>
    %27 = tpu.matmul %24, %26, %cst {dimension_numbers = #tpu.dot_dimension_numbers<[1], [0], [0], [1], [0, 0, 1, 1], [], []>} : vector<128x192xf32>, vector<192x128xf32>, vector<128x128xf32> -> vector<128x128xf32>
    %c0_36 = arith.constant 0 : index
    %c0_37 = arith.constant 0 : index
    %28 = vector.load %arg8[%c0_36, %c0_37] : memref<128x128xf32, #tpu.memory_space<vmem>>, vector<128x128xf32>
    tpu.vector_store %arg8[%c0_36, %c0_37], %27 {strides = array<i32>} : memref<128x128xf32, #tpu.memory_space<vmem>>, vector<128x128xf32>,
    %c16 = arith.constant 16 : index
    %c0_38 = arith.constant 0 : index
    %29 = vector.load %arg7[%c16, %c0_38] : memref<160x192xf32, #tpu.memory_space<vmem>>, vector<128x192xf32>
    %c1_39 = arith.constant 1 : index
    %c0_40 = arith.constant 0 : index
    %c0_41 = arith.constant 0 : index
    %30 = vector.load %arg4[%c1_39, %c0_40, %c0_41] : memref<3x192x128xf32, #tpu.memory_space<vmem>>, vector<1x192x128xf32>
    %31 = vector.shape_cast %30 : vector<1x192x128xf32> to vector<192x128xf32>
    %cst_42 = arith.constant dense<0.000000e+00> : vector<128x128xf32>
    %32 = tpu.matmul %29, %31, %cst_42 {dimension_numbers = #tpu.dot_dimension_numbers<[1], [0], [0], [1], [0, 0, 1, 1], [], []>} : vector<128x192xf32>, vector<192x128xf32>, vector<128x128xf32> -> vector<128x128xf32>
    %c0_43 = arith.constant 0 : index
    %c0_44 = arith.constant 0 : index
    %33 = vector.load %arg8[%c0_43, %c0_44] : memref<128x128xf32, #tpu.memory_space<vmem>>, vector<128x128xf32>
    %34 = arith.addf %33, %32 : vector<128x128xf32>
    %c0_45 = arith.constant 0 : index
    %c0_46 = arith.constant 0 : index
    %35 = vector.load %arg8[%c0_45, %c0_46] : memref<128x128xf32, #tpu.memory_space<vmem>>, vector<128x128xf32>
    tpu.vector_store %arg8[%c0_45, %c0_46], %34 {strides = array<i32>} : memref<128x128xf32, #tpu.memory_space<vmem>>, vector<128x128xf32>,
    %c32 = arith.constant 32 : index
    %c0_47 = arith.constant 0 : index
    %36 = vector.load %arg7[%c32, %c0_47] : memref<160x192xf32, #tpu.memory_space<vmem>>, vector<128x192xf32>
    %c2_48 = arith.constant 2 : index
    %c0_49 = arith.constant 0 : index
    %c0_50 = arith.constant 0 : index
    %37 = vector.load %arg4[%c2_48, %c0_49, %c0_50] : memref<3x192x128xf32, #tpu.memory_space<vmem>>, vector<1x192x128xf32>
    %38 = vector.shape_cast %37 : vector<1x192x128xf32> to vector<192x128xf32>
    %cst_51 = arith.constant dense<0.000000e+00> : vector<128x128xf32>
    %39 = tpu.matmul %36, %38, %cst_51 {dimension_numbers = #tpu.dot_dimension_numbers<[1], [0], [0], [1], [0, 0, 1, 1], [], []>} : vector<128x192xf32>, vector<192x128xf32>, vector<128x128xf32> -> vector<128x128xf32>
    %c0_52 = arith.constant 0 : index
    %c0_53 = arith.constant 0 : index
    %40 = vector.load %arg8[%c0_52, %c0_53] : memref<128x128xf32, #tpu.memory_space<vmem>>, vector<128x128xf32>
    %41 = arith.addf %40, %39 : vector<128x128xf32>
    %c0_54 = arith.constant 0 : index
    %c0_55 = arith.constant 0 : index
    %42 = vector.load %arg8[%c0_54, %c0_55] : memref<128x128xf32, #tpu.memory_space<vmem>>, vector<128x128xf32>
    tpu.vector_store %arg8[%c0_54, %c0_55], %41 {strides = array<i32>} : memref<128x128xf32, #tpu.memory_space<vmem>>, vector<128x128xf32>,
    %c0_56 = arith.constant 0 : index
    %c0_57 = arith.constant 0 : index
    %43 = vector.load %arg8[%c0_56, %c0_57] : memref<128x128xf32, #tpu.memory_space<vmem>>, vector<128x128xf32>
    %c0_58 = arith.constant 0 : index
    %c0_59 = arith.constant 0 : index
    %44 = vector.load %arg5[%c0_58, %c0_59] : memref<1x128xf32, #tpu.memory_space<vmem>>, vector<1x128xf32>
    %45 = vector.broadcast %44 : vector<1x128xf32> to vector<128x128xf32>
    %46 = arith.addf %43, %45 : vector<128x128xf32>
    %47 = vector.shape_cast %46 : vector<128x128xf32> to vector<8x16x128xf32>
    %48 = vector.shape_cast %47 : vector<8x16x128xf32> to vector<1x8x16x128xf32>
    %c0_60 = arith.constant 0 : index
    %c0_61 = arith.constant 0 : index
    %c0_62 = arith.constant 0 : index
    %c0_63 = arith.constant 0 : index
    %49 = vector.load %arg6[%c0_60, %c0_61, %c0_62, %c0_63] : memref<1x8x16x128xf32, #tpu.memory_space<vmem>>, vector<1x8x16x128xf32>
    tpu.vector_store %arg6[%c0_60, %c0_61, %c0_62, %c0_63], %48 {strides = array<i32>} : memref<1x8x16x128xf32, #tpu.memory_space<vmem>>, vector<1x8x16x128xf32>,
    return
  }
  func.func @transform_0(%arg0: i32, %arg1: i32) -> (i32, i32, i32, i32) {
    %c0_i32 = arith.constant 0 : i32
    %c0_i32_0 = arith.constant 0 : i32
    %c0_i32_1 = arith.constant 0 : i32
    return %arg0, %arg1, %c0_i32, %c0_i32_0 : i32, i32, i32, i32
  }
  func.func @transform_1(%arg0: i32, %arg1: i32) -> (i32, i32, i32, i32) {
    %c1_i32 = arith.constant 1 : i32
    %0 = arith.addi %arg1, %c1_i32 : i32
    %c4_i32 = arith.constant 4 : i32
    %1 = arith.muli %0, %c4_i32 : i32
    %c0_i32 = arith.constant 0 : i32
    %c0_i32_0 = arith.constant 0 : i32
    %c0_i32_1 = arith.constant 0 : i32
    return %arg0, %1, %c0_i32, %c0_i32_0 : i32, i32, i32, i32
  }
  func.func @transform_2(%arg0: i32, %arg1: i32) -> (i32, i32, i32) {
    %c0_i32 = arith.constant 0 : i32
    %c0_i32_0 = arith.constant 0 : i32
    %c0_i32_1 = arith.constant 0 : i32
    %c0_i32_2 = arith.constant 0 : i32
    return %c0_i32, %c0_i32_0, %c0_i32_1 : i32, i32, i32
  }
  func.func @transform_3(%arg0: i32, %arg1: i32) -> (i32, i32) {
    %c0_i32 = arith.constant 0 : i32
    %c0_i32_0 = arith.constant 0 : i32
    %c0_i32_1 = arith.constant 0 : i32
    return %c0_i32, %c0_i32_0 : i32, i32
  }
  func.func @transform_4(%arg0: i32, %arg1: i32) -> (i32, i32, i32, i32) {
    %c0_i32 = arith.constant 0 : i32
    %c0_i32_0 = arith.constant 0 : i32
    %c0_i32_1 = arith.constant 0 : i32
    return %arg0, %arg1, %c0_i32, %c0_i32_0 : i32, i32, i32, i32
  }
}

</mosaic_0001>

<bundles_post_ra>
// kernel: grouped_conv2d.1
= control target key start
LH: loop header
LB: loop body
LE: loop exit
PB: predicated region body
PF: predicated region fallthrough
CT: control target
= control target key end

     0   :  { %9 = vsyncpa [#allocation5], 0  ;;  %s2805_s0 = inlined_call_operand.vmem [shape: f32[2,18,18,64], index: 0, kind: input, shape index: {}, may-alias: {0,1}]   ;;  %s2806_s1 = inlined_call_operand.vmem [shape: f32[2,18,18,64], index: 1, kind: input, shape index: {}, may-alias: {0,1}]   ;;  %s2807_s2 = inlined_call_operand.vmem [shape: f32[3,192,128], index: 2, kind: input, shape index: {}]   ;;  %s2808_s3 = inlined_call_operand.vmem [shape: f32[1,128], index: 3, kind: input, shape index: {}]   ;;  %s2809_s4 = inlined_call_operand.hbm [shape: f32[2,16,16,128], index: 4, kind: output, shape index: {}]  }
   0x1   :  { %11 = vsyncpa [#allocation5 + $0x1], 0  ;;  %s2012_s15 = smov 0   ;;  %s2014_s16 = smov 0  }
   0x2   :  { %s2016_s17 = smov 0   ;;  %s2018_s18 = smov 0  }
   0x3   :  { %s2020_s19 = smov 0   ;;  %s2022_s20 = smov 0  }
   0x4   :  { %s2024_s21 = smov 0   ;;  %s2026_s22 = smov 0  }
   0x5 LB: > { %s1549_s23 = sadd.s32 4294967295, %s1980_s22   ;;  %s1550_s24 = sadd.s32 4294967294, %s1980_s22   ;;  %s1980_s22 = sphi %s2026_s22, %s17_s22   ;;  %s1976_s21 = sphi %s2024_s21, %s2822_s21   ;;  %s1972_s20 = sphi %s2022_s20, %s2821_s20   ;;  %s1968_s19 = sphi %s2020_s19, %s2820_s19   ;;  %s1964_s18 = sphi %s2018_s18, %s2819_s18   ;;  %s1960_s17 = sphi %s2016_s17, %s2818_s17   ;;  %s1956_s16 = sphi %s2014_s16, %s2817_s16   ;;  %s1952_s15 = sphi %s2012_s15, %s2816_s15  }
   0x6   : > { %s26_s25 = sadd.s32 1, %s1972_s20  ;;  %s29_s26 = sadd.s32 1, %s1976_s21 }
   0x7   : > { %p27_p0 = scmp.ge.s32.totalorder %s26_s25, 2  ;;  %p150_p1 = scmp.ne.s32.totalorder %s1960_s17, %s1956_s16 }
   0x8   : > { %p151_p2 = scmp.eq.s32.totalorder %s1549_s23, 3  ;;  %p156_p5 = scmp.ne.s32.totalorder %s1956_s16, %s1952_s15 }
   0x9   : > { %s2824_s25 = smov (%p27_p0, %s26_s25), 0  ;;  %s2826_s26 = smov (!%p27_p0, %s29_s26), %s1976_s21 }
   0xa   : > { %s136_s27 = ssub.s32 %s1972_s20, %s2824_s25  ;;  %p2063_p3 = por %p151_p2, %p150_p1 }
   0xb   : > { %p31_p4 = scmp.ge.s32.totalorder %s2826_s26, 2  ;;  %p157_p6 = scmp.eq.s32.totalorder %s1550_s24, 3 }
   0xc   : > { %p1555_p7 = scmp.ge.s32.totalorder %s1980_s22, 1  ;;  %p223_p9 = scmp.lt.s32.totalorder %s1980_s22, 5 }
   0xd   : > { %s2828_s26 = smov (%p31_p4, %s2826_s26), 0  ;;  %p2072_p8 = por %p157_p6, %p156_p5 }
   0xe   : > { %2812 = sst [smem:[#allocation7_spill]] %s2828_s26  ;;  %s135_s30 = ssub.s32 %s1976_s21, %s2828_s26 }
   0xf   : > { %s140_s5 = sadd.s32 1, %s1960_s17  ;;  %s137_s6 = sor.u32 %s136_s27, %s135_s30 }
  0x10   : > { %p224_p10 = pnand %p1555_p7, %p223_p9  ;;  %p138_p11 = scmp.eq.s32.totalorder %s137_s6, 0 }
  0x11   : > { %s2084_s8 = sshll.u32 (!%p224_p10), %s1964_s18, 3  ;;  %p277_p12 = scmp.lt.s32.totalorder (!%p224_p10), %s1968_s19, 1  ;;  %v542_v0 = vld [vmem:[%s2807_s2] sm:$0xff] (!%p224_p10)  ;;  %v543_v1 = vld [vmem:[%s2807_s2 + $0x8] sm:$0xff] (!%p224_p10)  ;;  %v1982_v3 = vmov (!%p224_p10), 0.0|0.0   ;;  %v544_v6 = vld [vmem:[%s2807_s2 + $0x10] sm:$0xff] (!%p224_p10) }
  0x12   : > { %s2081_s7 = scalar_select %p138_p11, %s1960_s17, %s140_s5  }
  0x13   : > { %227 = sbr.rel (%p224_p10) target bundleno = 485 (0x1e5), region = 36  ;;  %v1578_v2 = vld [vmem:[%s2807_s2 + $0xc0] sm:$0xff] (!%p224_p10)  ;;  %p279_p13 = scmp.lt.s32.totalorder (!%p224_p10), %s2084_s8, 17  ;;  %1676 = vmatprep.subr.bf16.mxu0 (!%p224_p10), %v1982_v3  ;;  %v1677_v4 = vpack.c.bf16 (!%p224_p10), %v543_v1, %v542_v0  ;;  %1712 = vmatprep.subr.bf16.mxu1 (!%p224_p10), %v1982_v3  ;;  %v1579_v5 = vld [vmem:[%s2807_s2 + $0xc8] sm:$0xff] (!%p224_p10)  ;;  %v545_v7 = vld [vmem:[%s2807_s2 + $0x18] sm:$0xff] (!%p224_p10)  ;;  %vm324_vm0 = vcmask (!%p224_p10), 523264  }
  0x14   : > { %v1713_v8 = vpack.c.bf16 (!%p224_p10), %v1579_v5, %v1578_v2  ;;  %v1580_v9 = vld [vmem:[%s2807_s2 + $0xd0] sm:$0xff] (!%p224_p10)  ;;  %v1581_v10 = vld [vmem:[%s2807_s2 + $0xd8] sm:$0xff] (!%p224_p10)  ;;  %v1680_v11 = vpack.c.bf16 (!%p224_p10), %v545_v7, %v544_v6  ;;  %v546_v13 = vld [vmem:[%s2807_s2 + $0x20] sm:$0xff] (!%p224_p10)  ;;  %vm429_vm1 = vcmask (!%p224_p10), 1048064  }
  0x15   : > { %1678 = vmatpush1.bf16.msra.mxu0 (!%p224_p10), %v1677_v4  ;;  %v1716_v12 = vpack.c.bf16 (!%p224_p10), %v1581_v10, %v1580_v9  ;;  %v547_v14 = vld [vmem:[%s2807_s2 + $0x28] sm:$0xff] (!%p224_p10)  ;;  %v1582_v15 = vld [vmem:[%s2807_s2 + $0xe0] sm:$0xff] (!%p224_p10)  ;;  %v548_v19 = vld [vmem:[%s2807_s2 + $0x30] sm:$0xff] (!%p224_p10) }
  0x16   : > { %1679 = vmatprep.subr.bf16.mxu0 (!%p224_p10), %v1982_v3  ;;  %1714 = vmatpush1.bf16.msra.mxu1 (!%p224_p10), %v1713_v8  ;;  %v1583_v16 = vld [vmem:[%s2807_s2 + $0xe8] sm:$0xff] (!%p224_p10)  ;;  %v1683_v17 = vpack.c.bf16 (!%p224_p10), %v547_v14, %v546_v13  ;;  %v549_v20 = vld [vmem:[%s2807_s2 + $0x38] sm:$0xff] (!%p224_p10)  ;;  %v1584_v21 = vld [vmem:[%s2807_s2 + $0xf0] sm:$0xff] (!%p224_p10) }
  0x17   : > { %1715 = vmatprep.subr.bf16.mxu1 (!%p224_p10), %v1982_v3  ;;  %v1719_v18 = vpack.c.bf16 (!%p224_p10), %v1583_v16, %v1582_v15  ;;  %v1585_v22 = vld [vmem:[%s2807_s2 + $0xf8] sm:$0xff] (!%p224_p10)  ;;  %v1686_v27 = vpack.c.bf16 (!%p224_p10), %v549_v20, %v548_v19  ;;  %v550_v29 = vld [vmem:[%s2807_s2 + $0x40] sm:$0xff] (!%p224_p10)  ;;  %v551_v30 = vld [vmem:[%s2807_s2 + $0x48] sm:$0xff] (!%p224_p10) }
  0x18   : > { %v1722_v28 = vpack.c.bf16 (!%p224_p10), %v1585_v22, %v1584_v21  ;;  %v1586_v31 = vld [vmem:[%s2807_s2 + $0x100] sm:$0xff] (!%p224_p10)  ;;  %v1587_v32 = vld [vmem:[%s2807_s2 + $0x108] sm:$0xff] (!%p224_p10)  ;;  %v1689_v35 = vpack.c.bf16 (!%p224_p10), %v551_v30, %v550_v29  ;;  %v552_v37 = vld [vmem:[%s2807_s2 + $0x50] sm:$0xff] (!%p224_p10) }
  0x19   : > { %1681 = vmatpush1.bf16.msra.mxu0 (!%p224_p10), %v1680_v11  ;;  %v1725_v36 = vpack.c.bf16 (!%p224_p10), %v1587_v32, %v1586_v31  ;;  %v553_v38 = vld [vmem:[%s2807_s2 + $0x58] sm:$0xff] (!%p224_p10)  ;;  %v1588_v39 = vld [vmem:[%s2807_s2 + $0x110] sm:$0xff] (!%p224_p10)  ;;  %v554_v41 = vld [vmem:[%s2807_s2 + $0x60] sm:$0xff] (!%p224_p10) }
  0x1a   : > { %s2109_s9 = scalar_select %p277_p12, %s1968_s19, 1  ;;  %1682 = vmatprep.subr.bf16.mxu0 %v1982_v3  ;;  %1717 = vmatpush1.bf16.msra.mxu1 %v1716_v12  ;;  %v1589_v40 = vld [vmem:[%s2807_s2 + $0x118] sm:$0xff]  ;;  %v1692_v44 = vpack.c.bf16 %v553_v38, %v552_v37  ;;  %v555_v47 = vld [vmem:[%s2807_s2 + $0x68] sm:$0xff]  ;;  %v1590_v48 = vld [vmem:[%s2807_s2 + $0x120] sm:$0xff] }
  0x1b   : > { %s280_s14 = scalar_select %p279_p13, %s2084_s8, 17  ;;  %1718 = vmatprep.subr.bf16.mxu1 %v1982_v3  ;;  %v1728_v45 = vpack.c.bf16 %v1589_v40, %v1588_v39  ;;  %v1591_v49 = vld [vmem:[%s2807_s2 + $0x128] sm:$0xff]  ;;  %v556_v53 = vld [vmem:[%s2807_s2 + $0x70] sm:$0xff]  ;;  %v557_v54 = vld [vmem:[%s2807_s2 + $0x78] sm:$0xff]  ;;  %v1695_v56 = vpack.c.bf16 %v555_v47, %v554_v41 }
  0x1c   : > { %s1809_s23 = smul.u32 54, %s2109_s9  ;;  %v1731_v57 = vpack.c.bf16 %v1591_v49, %v1590_v48  ;;  %v1592_v60 = vld [vmem:[%s2807_s2 + $0x130] sm:$0xff]  ;;  %v1593_v61 = vld [vmem:[%s2807_s2 + $0x138] sm:$0xff]  ;;  %v558_v4 = vld [vmem:[%s2807_s2 + $0x80] sm:$0xff]  ;;  %v1698_v7 = vpack.c.bf16 %v557_v54, %v556_v53  ;;  %s1662_s9 = sshll.u32 %s1968_s19, 5 }
  0x1d   : > { %s1808_s30 = smul.u32 3, %s280_s14  ;;  %1684 = vmatpush1.bf16.msra.mxu0 %v1683_v17  ;;  %s1675_s14 = sadd.s32 8, %s2084_s8  ;;  %v559_v5 = vld [vmem:[%s2807_s2 + $0x88] sm:$0xff]  ;;  %v1734_v8 = vpack.c.bf16 %v1593_v61, %v1592_v60  ;;  %v1594_v9 = vld [vmem:[%s2807_s2 + $0x140] sm:$0xff]  ;;  %v561_v19 = vld [vmem:[%s2807_s2 + $0x98] sm:$0xff] }
  0x1e   : > { %1720 = vmatpush1.bf16.msra.mxu1 %v1719_v18  ;;  %1685 = vmatprep.subr.bf16.mxu0 %v1982_v3  ;;  %p2195_p0 = scmp.lt.s32.totalorder %s1675_s14, 17  ;;  %v1595_v10 = vld [vmem:[%s2807_s2 + $0x148] sm:$0xff]  ;;  %v560_v18 = vld [vmem:[%s2807_s2 + $0x90] sm:$0xff]  ;;  %v1701_v22 = vpack.c.bf16 %v559_v5, %v558_v4  ;;  %v1598_v40 = vld [vmem:[%s2807_s2 + $0x160] sm:$0xff] }
  0x1f   : > { %s283_s26 = sadd.s32 %s1809_s23, %s1808_s30  ;;  %1721 = vmatprep.subr.bf16.mxu1 %v1982_v3  ;;  %v563_v39 = vld [vmem:[%s2807_s2 + $0xa8] sm:$0xff]  ;;  %v564_v49 = vld [vmem:[%s2807_s2 + $0xb0] sm:$0xff]  ;;  %v1601_v53 = vld [vmem:[%s2807_s2 + $0x178] sm:$0xff]  ;;  %s1673_s30 = sshll.u32 %s1964_s18, 4 }
  0x20   : > { %s1558_s24 = sshll.u32 %s283_s26, 3  ;;  %s2830_s14 = smov (!%p2195_p0, %s1675_s14), 17  ;;  %v1599_v41 = vld [vmem:[%s2807_s2 + $0x168] sm:$0xff] }
  0x21   : > { %s2142_s10 = scalar_lea.vmem %s2805_s0, %s1558_s24  ;;  %s1983_s24 = smov 64   ;;  %1687 = vmatpush1.bf16.msra.mxu0 %v1686_v27  ;;  %v1743_v48 = vpack.c.bf16 %v1599_v41, %v1598_v40 }
  0x22   : > { %v349_v23 = vld [vmem:[%s2142_s10 + $0x1] sm:$0xff]  ;;  %v350_v24 = vld [vmem:[%s2142_s10 + $0x9] sm:$0xff]  ;;  %v351_v25 = vld [vmem:[%s2142_s10 + $0x19] sm:$0xff]  ;;  %1723 = vmatpush1.bf16.msra.mxu1 %v1722_v28  ;;  %1688 = vmatprep.subr.bf16.mxu0 %v1982_v3  ;;  %s1810_s5 = smul.u32 3, %s2830_s14  ;;  %s1984_s14 = smov [#allocation4]  }
  0x23   : > { %381 = vrot.lane.b32.xlu0 %v349_v23, %s1983_s24  ;;  %383 = vrot.lane.b32.xlu1 %v350_v24, %s1983_s24  ;;  %v352_v26 = vld [vmem:[%s2142_s10 + $0x21] sm:$0xff]  ;;  %v353_v33 = vld [vmem:[%s2142_s10 + $0x31] sm:$0xff]  ;;  %v1737_v23 = vpack.c.bf16 %v1595_v10, %v1594_v9 }
  0x24   : > { %v354_v34 = vld [vmem:[%s2142_s10 + $0x39] sm:$0xff]  ;;  %1724 = vmatprep.subr.bf16.mxu1 %v1982_v3  ;;  %v355_v42 = vld [vmem:[%s2142_s10 + $0x49] sm:$0xff]  ;;  %v356_v43 = vld [vmem:[%s2142_s10 + $0x51] sm:$0xff]  ;;  %s2287_s13 = sadd.s32 %s1810_s5, %s1809_s23  ;;  %s1440_s23 = sadd.s32 %s1673_s30, %s1662_s9 }
  0x25   : > { %1690 = vmatpush1.bf16.msra.mxu0 %v1689_v35  ;;  %v308_v46 = vld [vmem:[%s2142_s10] sm:$0xff]  ;;  %v309_v50 = vld [vmem:[%s2142_s10 + $0x8] sm:$0xff]  ;;  %v310_v51 = vld [vmem:[%s2142_s10 + $0x18] sm:$0xff]  ;;  %s1561_s8 = sshll.u32 %s2287_s13, 3  ;;  %s1663_s18 = sshll.u32 %s1440_s23, 7 }
  0x26   : > { %1726 = vmatpush1.bf16.msra.mxu1 %v1725_v36  ;;  %1691 = vmatprep.subr.bf16.mxu0 %v1982_v3  ;;  %325 = vst.msk [vmem:[#allocation2] sm:$0xff] %vm324_vm0, %v308_v46  ;;  %v357_v52 = vld [vmem:[%s2142_s10 + $0x61] sm:$0xff]  ;;  %326 = vst.msk [vmem:[#allocation2 + $0x10] sm:$0xff] %vm324_vm0, %v309_v50  ;;  %v358_v55 = vld [vmem:[%s2142_s10 + $0x69] sm:$0xff]  ;;  %s2333_s13 = scalar_lea.vmem %s2806_s1, %s1561_s8  ;;  %s268_s8 = sand.u32 1, %s1956_s16  }
  0x27   : > { %385 = vrot.lane.b32.xlu0 %v351_v25, %s1983_s24  ;;  %387 = vrot.lane.b32.xlu1 %v352_v26, %s1983_s24  ;;  %327 = vst.msk [vmem:[#allocation2 + $0x20] sm:$0xff] %vm324_vm0, %v310_v51  ;;  %v470_v58 = vld [vmem:[%s2142_s10 + $0x2] sm:$0xff]  ;;  %v472_v62 = vld [vmem:[%s2142_s10 + $0x1a] sm:$0xff]  ;;  %s1556_s27 = sshll.u32 %s268_s8, 7  ;;  %s2745_s5 = scalar_lea.hbm %s2809_s4, %s1663_s18 }
  0x28   : > { %1727 = vmatprep.subr.bf16.mxu1 %v1982_v3  ;;  %v311_v59 = vld [vmem:[%s2142_s10 + $0x20] sm:$0xff]  ;;  %486 = vst.msk [vmem:[#allocation2 + $0x8] sm:$0xff] %vm324_vm0, %v470_v58  ;;  %488 = vst.msk [vmem:[#allocation2 + $0x28] sm:$0xff] %vm324_vm0, %v472_v62  ;;  %v312_v1 = vld [vmem:[%s2142_s10 + $0x30] sm:$0xff]  ;;  %s2696_s26 = scalar_lea.vmem [#allocation4], %s1556_s27  ;;  %s2753_s11 = scalar_lea.sflag [#allocation5], %s268_s8 }
  0x29   : > { %1693 = vmatpush1.bf16.msra.mxu0 %v1692_v44  ;;  %328 = vst.msk [vmem:[#allocation2 + $0x30] sm:$0xff] %vm324_vm0, %v311_v59  ;;  %v359_v63 = vld [vmem:[%s2142_s10 + $0x79] sm:$0xff]  ;;  %v360_v0 = vld [vmem:[%s2142_s10 + $0x81] sm:$0xff]  ;;  %v471_v2 = vld [vmem:[%s2142_s10 + $0xa] sm:$0xff]  ;;  %s1443_s19 = sshll.u32 %s2696_s26, 4  ;;  %s1890_s27 = sshll.u32 %s1984_s14, 4  ;;  %s2747_s19 = int_to_ptr.vmem [resolvable:$true] %s1443_s19  ;;  %s1891_s27 = int_to_ptr.vmem [resolvable:$false] %s1890_s27 }
  0x2a   : > { %1729 = vmatpush1.bf16.msra.mxu1 %v1728_v45  ;;  %1694 = vmatprep.subr.bf16.mxu0 %v1982_v3  ;;  %329 = vst.msk [vmem:[#allocation2 + $0x40] sm:$0xff] %vm324_vm0, %v312_v1  ;;  %487 = vst.msk [vmem:[#allocation2 + $0x18] sm:$0xff] %vm324_vm0, %v471_v2  ;;  %v313_v6 = vld [vmem:[%s2142_s10 + $0x38] sm:$0xff]  ;;  %v473_v11 = vld [vmem:[%s2142_s10 + $0x22] sm:$0xff]  ;;  %s1892_s12 = scalar_lea.vmem %s1891_s27, 4096  ;;  %p1893_p5 = scmp.lt.s32.totalorder %s2747_s19, %s1891_s27 }
  0x2b   : > { %389 = vrot.lane.b32.xlu0 %v353_v33, %s1983_s24  ;;  %391 = vrot.lane.b32.xlu1 %v354_v34, %s1983_s24  ;;  %330 = vst.msk [vmem:[#allocation2 + $0x50] sm:$0xff] %vm324_vm0, %v313_v6  ;;  %489 = vst.msk [vmem:[#allocation2 + $0x38] sm:$0xff] %vm324_vm0, %v473_v11  ;;  %v314_v12 = vld [vmem:[%s2142_s10 + $0x48] sm:$0xff]  ;;  %v474_v13 = vld [vmem:[%s2142_s10 + $0x32] sm:$0xff]  ;;  %v1704_v34 = vpack.c.bf16 %v561_v19, %v560_v18 }
  0x2c   : > { %1730 = vmatprep.subr.bf16.mxu1 %v1982_v3  ;;  %v315_v14 = vld [vmem:[%s2142_s10 + $0x50] sm:$0xff]  ;;  %v362_v16 = vld [vmem:[%s2142_s10 + $0x99] sm:$0xff]  ;;  %331 = vst.msk [vmem:[#allocation2 + $0x60] sm:$0xff] %vm324_vm0, %v314_v12  ;;  %490 = vst.msk [vmem:[#allocation2 + $0x48] sm:$0xff] %vm324_vm0, %v474_v13 }
  0x2d   : > { %1696 = vmatpush1.bf16.msra.mxu0 %v1695_v56  ;;  %v361_v15 = vld [vmem:[%s2142_s10 + $0x91] sm:$0xff]  ;;  %332 = vst.msk [vmem:[#allocation2 + $0x70] sm:$0xff] %vm324_vm0, %v315_v14  ;;  %v475_v17 = vld [vmem:[%s2142_s10 + $0x3a] sm:$0xff]  ;;  %v317_v28 = vld [vmem:[%s2142_s10 + $0x68] sm:$0xff] }
  0x2e   : > { %1732 = vmatpush1.bf16.msra.mxu1 %v1731_v57  ;;  %1697 = vmatprep.subr.bf16.mxu0 %v1982_v3  ;;  %491 = vst.msk [vmem:[#allocation2 + $0x58] sm:$0xff] %vm324_vm0, %v475_v17  ;;  %v316_v20 = vld [vmem:[%s2142_s10 + $0x60] sm:$0xff]  ;;  %v476_v21 = vld [vmem:[%s2142_s10 + $0x4a] sm:$0xff]  ;;  %v1597_v25 = vld [vmem:[%s2807_s2 + $0x158] sm:$0xff] }
  0x2f   : > { %393 = vrot.lane.b32.xlu0 %v355_v42, %s1983_s24  ;;  %395 = vrot.lane.b32.xlu1 %v356_v43, %s1983_s24  ;;  %v1596_v24 = vld [vmem:[%s2807_s2 + $0x150] sm:$0xff]  ;;  %v511_v26 = vld [vmem:[#allocation2 + $0x8] sm:$0xff]  ;;  %333 = vst.msk [vmem:[#allocation2 + $0x80] sm:$0xff] %vm324_vm0, %v316_v20  ;;  %492 = vst.msk [vmem:[#allocation2 + $0x68] sm:$0xff] %vm324_vm0, %v476_v21 }
  0x30   : > { %1733 = vmatprep.subr.bf16.mxu1 %v1982_v3  ;;  %v2315_v27 = vld [vmem:[#allocation2 + $0x28] sm:$0xff]  ;;  %v477_v29 = vld [vmem:[%s2142_s10 + $0x52] sm:$0xff]  ;;  %1562 = vmatprep.mubr.msk.f32.mxu0 %vm324_vm0, %v511_v26  ;;  %334 = vst.msk [vmem:[#allocation2 + $0x90] sm:$0xff] %vm324_vm0, %v317_v28  ;;  %v1740_v35 = vpack.c.bf16 %v1597_v25, %v1596_v24  ;;  %v562_v36 = vld [vmem:[%s2807_s2 + $0xa0] sm:$0xff] }
  0x31   : > { %1699 = vmatpush1.bf16.msra.mxu0 %v1698_v7  ;;  %v363_v30 = vld [vmem:[%s2142_s10 + $0xa9] sm:$0xff]  ;;  %v364_v31 = vld [vmem:[%s2142_s10 + $0xb1] sm:$0xff]  ;;  %1602 = vmatprep.mubr.msk.f32.mxu1 %vm324_vm0, %v2315_v27  ;;  %493 = vst.msk [vmem:[#allocation2 + $0x78] sm:$0xff] %vm324_vm0, %v477_v29  ;;  %v319_v37 = vld [vmem:[%s2142_s10 + $0x80] sm:$0xff]  ;;  %v1707_v47 = vpack.c.bf16 %v563_v39, %v562_v36 }
  0x32   : > { %1735 = vmatpush1.bf16.msra.mxu1 %v1734_v8  ;;  %1700 = vmatprep.subr.bf16.mxu0 %v1982_v3  ;;  %v318_v32 = vld [vmem:[%s2142_s10 + $0x78] sm:$0xff]  ;;  %v478_v33 = vld [vmem:[%s2142_s10 + $0x62] sm:$0xff]  ;;  %v479_v38 = vld [vmem:[%s2142_s10 + $0x6a] sm:$0xff]  ;;  %336 = vst.msk [vmem:[#allocation2 + $0xb0] sm:$0xff] %vm324_vm0, %v319_v37 }
  0x33   : > { %397 = vrot.lane.b32.xlu0 %v357_v52, %s1983_s24  ;;  %399 = vrot.lane.b32.xlu1 %v358_v55, %s1983_s24  ;;  %335 = vst.msk [vmem:[#allocation2 + $0xa0] sm:$0xff] %vm324_vm0, %v318_v32  ;;  %494 = vst.msk [vmem:[#allocation2 + $0x88] sm:$0xff] %vm324_vm0, %v478_v33  ;;  %v320_v42 = vld [vmem:[%s2142_s10 + $0x90] sm:$0xff]  ;;  %v480_v43 = vld [vmem:[%s2142_s10 + $0x7a] sm:$0xff] }
  0x34   : > { %1736 = vmatprep.subr.bf16.mxu1 %v1982_v3  ;;  %495 = vst.msk [vmem:[#allocation2 + $0x98] sm:$0xff] %vm324_vm0, %v479_v38  ;;  %v446_v44 = vld [vmem:[%s2333_s13 + $0x1] sm:$0xff]  ;;  %337 = vst.msk [vmem:[#allocation2 + $0xc0] sm:$0xff] %vm324_vm0, %v320_v42  ;;  %v447_v46 = vld [vmem:[%s2333_s13 + $0x9] sm:$0xff] }
  0x35   : > { %1702 = vmatpush1.bf16.msra.mxu0 %v1701_v22  ;;  %496 = vst.msk [vmem:[#allocation2 + $0xa8] sm:$0xff] %vm324_vm0, %v480_v43  ;;  %v481_v45 = vld [vmem:[%s2142_s10 + $0x82] sm:$0xff]  ;;  %v482_v50 = vld [vmem:[%s2142_s10 + $0x92] sm:$0xff]  ;;  %v483_v59 = vld [vmem:[%s2142_s10 + $0x9a] sm:$0xff] }
  0x36   : > { %1738 = vmatpush1.bf16.msra.mxu1 %v1737_v23  ;;  %1703 = vmatprep.subr.bf16.mxu0 %v1982_v3  ;;  %497 = vst.msk [vmem:[#allocation2 + $0xb8] sm:$0xff] %vm324_vm0, %v481_v45  ;;  %v565_v51 = vld [vmem:[%s2807_s2 + $0xb8] sm:$0xff]  ;;  %v1600_v52 = vld [vmem:[%s2807_s2 + $0x170] sm:$0xff]  ;;  %498 = vst.msk [vmem:[#allocation2 + $0xc8] sm:$0xff] %vm324_vm0, %v482_v50 }
  0x37   : > { %401 = vrot.lane.b32.xlu0 %v359_v63, %s1983_s24  ;;  %403 = vrot.lane.b32.xlu1 %v360_v0, %s1983_s24  ;;  %v321_v54 = vld [vmem:[%s2142_s10 + $0x98] sm:$0xff]  ;;  %v449_v56 = vld [vmem:[%s2333_s13 + $0x21] sm:$0xff]  ;;  %v1710_v57 = vpack.c.bf16 %v565_v51, %v564_v49  ;;  %v1746_v58 = vpack.c.bf16 %v1601_v53, %v1600_v52  ;;  %499 = vst.msk [vmem:[#allocation2 + $0xd8] sm:$0xff] %vm324_vm0, %v483_v59 }
  0x38   : > { %1739 = vmatprep.subr.bf16.mxu1 %v1982_v3  ;;  %338 = vst.msk [vmem:[#allocation2 + $0xd0] sm:$0xff] %vm324_vm0, %v321_v54  ;;  %v448_v55 = vld [vmem:[%s2333_s13 + $0x19] sm:$0xff]  ;;  %v322_v60 = vld [vmem:[%s2142_s10 + $0xa8] sm:$0xff]  ;;  %v323_v62 = vld [vmem:[%s2142_s10 + $0xb0] sm:$0xff] }
  0x39   : > { %1705 = vmatpush1.bf16.msra.mxu0 %v1704_v34  ;;  %339 = vst.msk [vmem:[#allocation2 + $0xe0] sm:$0xff] %vm324_vm0, %v322_v60  ;;  %v484_v61 = vld [vmem:[%s2142_s10 + $0xaa] sm:$0xff]  ;;  %340 = vst.msk [vmem:[#allocation2 + $0xf0] sm:$0xff] %vm324_vm0, %v323_v62  ;;  %v485_v63 = vld [vmem:[%s2142_s10 + $0xb2] sm:$0xff] }
  0x3a   : > { %1741 = vmatpush1.bf16.msra.mxu1 %v1740_v35  ;;  %1706 = vmatprep.subr.bf16.mxu0 %v1982_v3  ;;  %500 = vst.msk [vmem:[#allocation2 + $0xe8] sm:$0xff] %vm324_vm0, %v484_v61  ;;  %501 = vst.msk [vmem:[#allocation2 + $0xf8] sm:$0xff] %vm324_vm0, %v485_v63  ;;  %v341_v0 = vld [vmem:[%s2333_s13] sm:$0xff]  ;;  %v342_v2 = vld [vmem:[%s2333_s13 + $0x8] sm:$0xff] }
  0x3b   : > { %405 = vrot.lane.b32.xlu0 %v361_v15, %s1983_s24  ;;  %407 = vrot.lane.b32.xlu1 %v362_v16, %s1983_s24  ;;  %345 = vst.msk [vmem:[#allocation2 + $0x100] sm:$0xff] %vm324_vm0, %v341_v0  ;;  %v502_v1 = vld [vmem:[%s2333_s13 + $0x2] sm:$0xff]  ;;  %346 = vst.msk [vmem:[#allocation2 + $0x110] sm:$0xff] %vm324_vm0, %v342_v2  ;;  %v503_v4 = vld [vmem:[%s2333_s13 + $0xa] sm:$0xff] }
  0x3c   : > { %1742 = vmatprep.subr.bf16.mxu1 %v1982_v3  ;;  %506 = vst.msk [vmem:[#allocation2 + $0x108] sm:$0xff] %vm324_vm0, %v502_v1  ;;  %507 = vst.msk [vmem:[#allocation2 + $0x118] sm:$0xff] %vm324_vm0, %v503_v4  ;;  %v343_v5 = vld [vmem:[%s2333_s13 + $0x18] sm:$0xff]  ;;  %v344_v7 = vld [vmem:[%s2333_s13 + $0x20] sm:$0xff] }
  0x3d   : > { %1708 = vmatpush1.bf16.msra.mxu0 %v1707_v47  ;;  %347 = vst.msk [vmem:[#allocation2 + $0x120] sm:$0xff] %vm324_vm0, %v343_v5  ;;  %v504_v6 = vld [vmem:[%s2333_s13 + $0x1a] sm:$0xff]  ;;  %348 = vst.msk [vmem:[#allocation2 + $0x130] sm:$0xff] %vm324_vm0, %v344_v7  ;;  %v505_v8 = vld [vmem:[%s2333_s13 + $0x22] sm:$0xff]  ;;  %s1886_s13 = scalar_lea.vmem %s2747_s19, 2048 }
  0x3e   : > { %1744 = vmatpush1.bf16.msra.mxu1 %v1743_v48  ;;  %1709 = vmatprep.subr.bf16.mxu0 %v1982_v3  ;;  %508 = vst.msk [vmem:[#allocation2 + $0x128] sm:$0xff] %vm324_vm0, %v504_v6  ;;  %509 = vst.msk [vmem:[#allocation2 + $0x138] sm:$0xff] %vm324_vm0, %v505_v8  ;;  %v1618_v11 = vld [vmem:[%s2807_s2 + $0x180] sm:$0xff]  ;;  %v1619_v12 = vld [vmem:[%s2807_s2 + $0x188] sm:$0xff]  ;;  %p1887_p1 = scmp.ne.s32.totalorder %s2747_s19, %s1886_s13  ;;  %p1894_p6 = scmp.lt.s32.totalorder %s1892_s12, %s1886_s13 }
  0x3f   : > { %409 = vrot.lane.b32.xlu0 %v363_v30, %s1983_s24  ;;  %411 = vrot.lane.b32.xlu1 %v364_v31, %s1983_s24  ;;  %v1749_v15 = vpack.c.bf16 %v1619_v12, %v1618_v11  ;;  %v513_v16 = vld [vmem:[#allocation2 + $0x18] sm:$0xff]  ;;  %v1620_v20 = vld [vmem:[%s2807_s2 + $0x190] sm:$0xff]  ;;  %v1622_v29 = vld [vmem:[%s2807_s2 + $0x1a0] sm:$0xff] }
  0x40   : > { %1745 = vmatprep.subr.bf16.mxu1 %v1982_v3  ;;  %v1621_v21 = vld [vmem:[%s2807_s2 + $0x198] sm:$0xff]  ;;  %v1623_v30 = vld [vmem:[%s2807_s2 + $0x1a8] sm:$0xff]  ;;  %v1624_v36 = vld [vmem:[%s2807_s2 + $0x1b0] sm:$0xff]  ;;  %p1888_p2 = pnand %p1887_p1, %p2063_p3  ;;  %p1895_p7 = por %p1894_p6, %p1893_p5 }
  0x41   : > { %1711 = vmatpush1.bf16.msra.mxu0 %v1710_v57  ;;  %v778_v24 = vld [vmem:[#allocation2 + $0x38] sm:$0xff]  ;;  %v1752_v25 = vpack.c.bf16 %v1621_v21, %v1620_v20  ;;  %v2451_v32 = vld [vmem:[#allocation2 + $0x48] sm:$0xff]  ;;  %v1755_v33 = vpack.c.bf16 %v1623_v30, %v1622_v29  ;;  %v1626_v42 = vld [vmem:[%s2807_s2 + $0x1c0] sm:$0xff] }
  0x42   : > { %1747 = vmatpush1.bf16.msra.mxu1 %v1746_v58  ;;  %1748 = vmatprep.subr.bf16.mxu0 %v1982_v3  ;;  %v2467_v38 = vld [vmem:[#allocation2 + $0x58] sm:$0xff]  ;;  %v1627_v43 = vld [vmem:[%s2807_s2 + $0x1c8] sm:$0xff]  ;;  %v1628_v49 = vld [vmem:[%s2807_s2 + $0x1d0] sm:$0xff]  ;;  %p1889_p4 = pneg %p1888_p2 }
  0x43   : > { %454 = vrot.lane.b32.xlu0 %v446_v44, %s1983_s24  ;;  %456 = vrot.lane.b32.xlu1 %v447_v46, %s1983_s24  ;;  %v2485_v45 = vld [vmem:[#allocation2 + $0x68] sm:$0xff]  ;;  %v1761_v46 = vpack.c.bf16 %v1627_v43, %v1626_v42  ;;  %v1629_v50 = vld [vmem:[%s2807_s2 + $0x1d8] sm:$0xff]  ;;  %v1632_v63 = vld [vmem:[%s2807_s2 + $0x1f0] sm:$0xff] }
  0x44   : > { %1784 = vmatprep.subr.bf16.mxu1 %v1982_v3  ;;  %v2505_v52 = vld [vmem:[#allocation2 + $0x78] sm:$0xff]  ;;  %v1764_v53 = vpack.c.bf16 %v1629_v50, %v1628_v49  ;;  %v1631_v57 = vld [vmem:[%s2807_s2 + $0x1e8] sm:$0xff]  ;;  %v1634_v7 = vld [vmem:[%s2807_s2 + $0x200] sm:$0xff]  ;;  %p1896_p9 = pnand %p1895_p7, %p1889_p4 }
  0x45   : > { %v2525_v59 = vld [vmem:[#allocation2 + $0x88] sm:$0xff]  ;;  %v1633_v0 = vld [vmem:[%s2807_s2 + $0x1f8] sm:$0xff]  ;;  %v1636_v12 = vld [vmem:[%s2807_s2 + $0x210] sm:$0xff] }
  0x46   : > { %v2545_v2 = vld [vmem:[#allocation2 + $0x98] sm:$0xff]  ;;  %v1770_v4 = vpack.c.bf16 %v1633_v0, %v1632_v63  ;;  %v1635_v8 = vld [vmem:[%s2807_s2 + $0x208] sm:$0xff] }
  0x47   : > { %458 = vrot.lane.b32.xlu0 %v448_v55, %s1983_s24  ;;  %460 = vrot.lane.b32.xlu1 %v449_v56, %s1983_s24  ;;  %v1630_v56 = vld [vmem:[%s2807_s2 + $0x1e0] sm:$0xff]  ;;  %v1773_v11 = vpack.c.bf16 %v1635_v8, %v1634_v7  ;;  %v796_v20 = vld [vmem:[#allocation2 + $0xc8] sm:$0xff] }
  0x48   : > { %v1767_v60 = vpack.c.bf16 %v1631_v57, %v1630_v56  ;;  %v800_v29 = vld [vmem:[#allocation2 + $0xe8] sm:$0xff] }
  0x95   : > { %v382_v9 = vpop.permute.xlu0 %381  ;;  %v384_v10 = vpop.permute.xlu1 %383 }
  0x96   : > { %430 = vst.msk [vmem:[#allocation2] sm:$0xff] %vm429_vm1, %v382_v9  ;;  %431 = vst.msk [vmem:[#allocation2 + $0x10] sm:$0xff] %vm429_vm1, %v384_v10  ;;  %v2565_v10 = vld [vmem:[#allocation2 + $0xa8] sm:$0xff] }
  0x99   : > { %v386_v13 = vpop.permute.xlu0 %385  ;;  %v388_v14 = vpop.permute.xlu1 %387 }
  0x9a   : > { %432 = vst.msk [vmem:[#allocation2 + $0x20] sm:$0xff] %vm429_vm1, %v386_v13  ;;  %433 = vst.msk [vmem:[#allocation2 + $0x30] sm:$0xff] %vm429_vm1, %v388_v14  ;;  %v1637_v13 = vld [vmem:[%s2807_s2 + $0x218] sm:$0xff] }
  0x9d   : > { %v510_v17 = vld [vmem:[#allocation2] sm:$0xff]  ;;  %v390_v18 = vpop.permute.xlu0 %389  ;;  %v392_v19 = vpop.permute.xlu1 %391  ;;  %v512_v22 = vld [vmem:[#allocation2 + $0x10] sm:$0xff] }
  0x9e   : > { %679 = vmatmul.mubr.f32.vlgmr.msra.gmra.mrb[0].mxu0 %v510_v17  ;;  %434 = vst.msk [vmem:[#allocation2 + $0x40] sm:$0xff] %vm429_vm1, %v390_v18  ;;  %435 = vst.msk [vmem:[#allocation2 + $0x50] sm:$0xff] %vm429_vm1, %v392_v19  ;;  %v1638_v17 = vld [vmem:[%s2807_s2 + $0x220] sm:$0xff]  ;;  %v1639_v18 = vld [vmem:[%s2807_s2 + $0x228] sm:$0xff] }
  0x9f   : > { %1563 = vmatprep.mubr.msk.f32.mxu0 %vm324_vm0, %v513_v16  ;;  %1750 = vmatpush1.bf16.msra.mxu0 %v1749_v15  ;;  %v1776_v16 = vpack.c.bf16 %v1637_v13, %v1636_v12  ;;  %v1779_v21 = vpack.c.bf16 %v1639_v18, %v1638_v17 }
  0xa0   : > { %1751 = vmatprep.subr.bf16.mxu0 %v1982_v3 }
  0xa1   : > { %v775_v23 = vld [vmem:[#allocation2 + $0x20] sm:$0xff]  ;;  %v394_v26 = vpop.permute.xlu0 %393  ;;  %v396_v28 = vpop.permute.xlu1 %395  ;;  %v777_v31 = vld [vmem:[#allocation2 + $0x30] sm:$0xff] }
  0xa2   : > { %684 = vmatmul.mubr.f32.gmra.mrb[2].mxu0 %v512_v22  ;;  %945 = vmatmul.mubr.f32.vlgmr.msra.gmra.mrb[0].mxu1 %v775_v23  ;;  %436 = vst.msk [vmem:[#allocation2 + $0x60] sm:$0xff] %vm429_vm1, %v394_v26  ;;  %437 = vst.msk [vmem:[#allocation2 + $0x70] sm:$0xff] %vm429_vm1, %v396_v28  ;;  %v1640_v22 = vld [vmem:[%s2807_s2 + $0x230] sm:$0xff] }
  0xa3   : > { %1796 = vmatpush1.bf16.msra.mxu1 %v1749_v15  ;;  %1564 = vmatprep.mubr.msk.f32.mxu0 %vm324_vm0, %v2315_v27  ;;  %v1625_v27 = vld [vmem:[%s2807_s2 + $0x1b8] sm:$0xff] }
  0xa4   : > { %1603 = vmatprep.mubr.msk.f32.mxu1 %vm324_vm0, %v778_v24  ;;  %1785 = vmatprep.subr.bf16.mxu1 %v1982_v3  ;;  %v1758_v39 = vpack.c.bf16 %v1625_v27, %v1624_v36  ;;  %v2583_v15 = vld [vmem:[#allocation2 + $0xb8] sm:$0xff] }
  0xa5   : > { %1753 = vmatpush1.bf16.msra.mxu0 %v1752_v25  ;;  %v398_v34 = vpop.permute.xlu0 %397  ;;  %v400_v35 = vpop.permute.xlu1 %399  ;;  %v2462_v37 = vld [vmem:[#allocation2 + $0x40] sm:$0xff]  ;;  %v2483_v44 = vld [vmem:[#allocation2 + $0x50] sm:$0xff] }
  0xa6   : > { %689 = vmatmul.mubr.f32.gmra.mrb[4].mxu0 %v775_v23  ;;  %950 = vmatmul.mubr.f32.gmra.mrb[2].mxu1 %v777_v31  ;;  %438 = vst.msk [vmem:[#allocation2 + $0x80] sm:$0xff] %vm429_vm1, %v398_v34  ;;  %439 = vst.msk [vmem:[#allocation2 + $0x90] sm:$0xff] %vm429_vm1, %v400_v35  ;;  %v1641_v23 = vld [vmem:[%s2807_s2 + $0x238] sm:$0xff]  ;;  %v804_v34 = vld [vmem:[#allocation2 + $0x108] sm:$0xff] }
  0xa7   : > { %1797 = vmatpush1.bf16.msra.mxu1 %v1752_v25  ;;  %1565 = vmatprep.mubr.msk.f32.mxu0 %vm324_vm0, %v778_v24  ;;  %v798_v25 = vld [vmem:[#allocation2 + $0xd8] sm:$0xff]  ;;  %v1782_v26 = vpack.c.bf16 %v1641_v23, %v1640_v22 }
  0xa8   : > { %1604 = vmatprep.mubr.msk.f32.mxu1 %vm324_vm0, %v2451_v32  ;;  %1754 = vmatprep.subr.bf16.mxu0 %v1982_v3  ;;  %v806_v35 = vld [vmem:[#allocation2 + $0x118] sm:$0xff] }
  0xa9   : > { %1786 = vmatprep.subr.bf16.mxu1 %v1982_v3  ;;  %1756 = vmatpush1.bf16.msra.mxu0 %v1755_v33  ;;  %v402_v40 = vpop.permute.xlu0 %401  ;;  %v404_v41 = vpop.permute.xlu1 %403  ;;  %v2503_v51 = vld [vmem:[#allocation2 + $0x60] sm:$0xff]  ;;  %v2523_v58 = vld [vmem:[#allocation2 + $0x70] sm:$0xff] }
  0xaa   : > { %694 = vmatmul.mubr.f32.gmra.mrb[6].mxu0 %v777_v31  ;;  %955 = vmatmul.mubr.f32.gmra.mrb[4].mxu1 %v2462_v37  ;;  %440 = vst.msk [vmem:[#allocation2 + $0xa0] sm:$0xff] %vm429_vm1, %v402_v40  ;;  %441 = vst.msk [vmem:[#allocation2 + $0xb0] sm:$0xff] %vm429_vm1, %v404_v41  ;;  %v802_v31 = vld [vmem:[#allocation2 + $0xf8] sm:$0xff] }
  0xab   : > { %1566 = vmatprep.mubr.msk.f32.mxu0 %vm324_vm0, %v2451_v32  ;;  %1605 = vmatprep.mubr.msk.f32.mxu1 %vm324_vm0, %v2467_v38 }
  0xac   : > { %1798 = vmatpush1.bf16.msra.mxu1 %v1755_v33  ;;  %1757 = vmatprep.subr.bf16.mxu0 %v1982_v3 }
  0xad   : > { %1787 = vmatprep.subr.bf16.mxu1 %v1982_v3  ;;  %1759 = vmatpush1.bf16.msra.mxu0 %v1758_v39  ;;  %v406_v47 = vpop.permute.xlu0 %405  ;;  %v408_v48 = vpop.permute.xlu1 %407  ;;  %v2543_v1 = vld [vmem:[#allocation2 + $0x80] sm:$0xff]  ;;  %v2563_v9 = vld [vmem:[#allocation2 + $0x90] sm:$0xff] }
  0xae   : > { %699 = vmatmul.mubr.f32.gmra.mrb[8].mxu0 %v2462_v37  ;;  %960 = vmatmul.mubr.f32.gmra.mrb[6].mxu1 %v2483_v44  ;;  %442 = vst.msk [vmem:[#allocation2 + $0xc0] sm:$0xff] %vm429_vm1, %v406_v47  ;;  %443 = vst.msk [vmem:[#allocation2 + $0xd0] sm:$0xff] %vm429_vm1, %v408_v48 }
  0xaf   : > { %1567 = vmatprep.mubr.msk.f32.mxu0 %vm324_vm0, %v2467_v38  ;;  %1606 = vmatprep.mubr.msk.f32.mxu1 %vm324_vm0, %v2485_v45 }
  0xb0   : > { %1799 = vmatpush1.bf16.msra.mxu1 %v1758_v39  ;;  %1760 = vmatprep.subr.bf16.mxu0 %v1982_v3 }
  0xb1   : > { %1788 = vmatprep.subr.bf16.mxu1 %v1982_v3  ;;  %1762 = vmatpush1.bf16.msra.mxu0 %v1761_v46  ;;  %v410_v54 = vpop.permute.xlu0 %409  ;;  %v412_v55 = vpop.permute.xlu1 %411  ;;  %v2581_v14 = vld [vmem:[#allocation2 + $0xa0] sm:$0xff]  ;;  %v2599_v19 = vld [vmem:[#allocation2 + $0xb0] sm:$0xff] }
  0xb2   : > { %704 = vmatmul.mubr.f32.gmra.mrb[10].mxu0 %v2483_v44  ;;  %965 = vmatmul.mubr.f32.gmra.mrb[8].mxu1 %v2503_v51  ;;  %444 = vst.msk [vmem:[#allocation2 + $0xe0] sm:$0xff] %vm429_vm1, %v410_v54  ;;  %445 = vst.msk [vmem:[#allocation2 + $0xf0] sm:$0xff] %vm429_vm1, %v412_v55 }
  0xb3   : > { %1568 = vmatprep.mubr.msk.f32.mxu0 %vm324_vm0, %v2485_v45  ;;  %1607 = vmatprep.mubr.msk.f32.mxu1 %vm324_vm0, %v2505_v52 }
  0xb4   : > { %1800 = vmatpush1.bf16.msra.mxu1 %v1761_v46  ;;  %1763 = vmatprep.subr.bf16.mxu0 %v1982_v3 }
  0xb5   : > { %1789 = vmatprep.subr.bf16.mxu1 %v1982_v3  ;;  %1765 = vmatpush1.bf16.msra.mxu0 %v1764_v53  ;;  %v455_v61 = vpop.permute.xlu0 %454  ;;  %v457_v62 = vpop.permute.xlu1 %456  ;;  %v795_v24 = vld [vmem:[#allocation2 + $0xc0] sm:$0xff]  ;;  %v797_v28 = vld [vmem:[#allocation2 + $0xd0] sm:$0xff] }
  0xb6   : > { %709 = vmatmul.mubr.f32.gmra.mrb[12].mxu0 %v2503_v51  ;;  %970 = vmatmul.mubr.f32.gmra.mrb[10].mxu1 %v2523_v58  ;;  %466 = vst.msk [vmem:[#allocation2 + $0x100] sm:$0xff] %vm429_vm1, %v455_v61  ;;  %467 = vst.msk [vmem:[#allocation2 + $0x110] sm:$0xff] %vm429_vm1, %v457_v62 }
  0xb7   : > { %1569 = vmatprep.mubr.msk.f32.mxu0 %vm324_vm0, %v2505_v52  ;;  %1608 = vmatprep.mubr.msk.f32.mxu1 %vm324_vm0, %v2525_v59 }
  0xb8   : > { %1801 = vmatpush1.bf16.msra.mxu1 %v1764_v53  ;;  %1766 = vmatprep.subr.bf16.mxu0 %v1982_v3 }
  0xb9   : > { %1790 = vmatprep.subr.bf16.mxu1 %v1982_v3  ;;  %1768 = vmatpush1.bf16.msra.mxu0 %v1767_v60  ;;  %v459_v5 = vpop.permute.xlu0 %458  ;;  %v461_v6 = vpop.permute.xlu1 %460  ;;  %v799_v30 = vld [vmem:[#allocation2 + $0xe0] sm:$0xff]  ;;  %v801_v33 = vld [vmem:[#allocation2 + $0xf0] sm:$0xff] }
  0xba   : > { %714 = vmatmul.mubr.f32.gmra.mrb[14].mxu0 %v2523_v58  ;;  %975 = vmatmul.mubr.f32.gmra.mrb[12].mxu1 %v2543_v1  ;;  %468 = vst.msk [vmem:[#allocation2 + $0x120] sm:$0xff] %vm429_vm1, %v459_v5  ;;  %469 = vst.msk [vmem:[#allocation2 + $0x130] sm:$0xff] %vm429_vm1, %v461_v6 }
  0xbb   : > { %1570 = vmatprep.mubr.msk.f32.mxu0 %vm324_vm0, %v2525_v59  ;;  %1609 = vmatprep.mubr.msk.f32.mxu1 %vm324_vm0, %v2545_v2 }
  0xbc   : > { %1802 = vmatpush1.bf16.msra.mxu1 %v1767_v60  ;;  %1769 = vmatprep.subr.bf16.mxu0 %v1982_v3 }
  0xbd   : > { %1791 = vmatprep.subr.bf16.mxu1 %v1982_v3  ;;  %1771 = vmatpush1.bf16.msra.mxu0 %v1770_v4  ;;  %v805_v36 = vld [vmem:[#allocation2 + $0x110] sm:$0xff] }
  0xbe   : > { %719 = vmatmul.mubr.f32.gmra.mrb[16].mxu0 %v2543_v1  ;;  %980 = vmatmul.mubr.f32.gmra.mrb[14].mxu1 %v2563_v9 }
  0xbf   : > { %1571 = vmatprep.mubr.msk.f32.mxu0 %vm324_vm0, %v2545_v2  ;;  %1610 = vmatprep.mubr.msk.f32.mxu1 %vm324_vm0, %v2565_v10 }
  0xc0   : > { %1803 = vmatpush1.bf16.msra.mxu1 %v1770_v4  ;;  %1772 = vmatprep.subr.bf16.mxu0 %v1982_v3 }
  0xc1   : > { %1792 = vmatprep.subr.bf16.mxu1 %v1982_v3  ;;  %1774 = vmatpush1.bf16.msra.mxu0 %v1773_v11  ;;  %v1101_v27 = vld [vmem:[#allocation2 + $0x120] sm:$0xff] }
  0xc2   : > { %724 = vmatmul.mubr.f32.gmra.mrb[18].mxu0 %v2563_v9  ;;  %985 = vmatmul.mubr.f32.gmra.mrb[16].mxu1 %v2581_v14 }
  0xc3   : > { %1572 = vmatprep.mubr.msk.f32.mxu0 %vm324_vm0, %v2565_v10  ;;  %1611 = vmatprep.mubr.msk.f32.mxu1 %vm324_vm0, %v2583_v15 }
  0xc4   : > { %1804 = vmatpush1.bf16.msra.mxu1 %v1773_v11  ;;  %1775 = vmatprep.subr.bf16.mxu0 %v1982_v3 }
  0xc5   : > { %1793 = vmatprep.subr.bf16.mxu1 %v1982_v3  ;;  %1777 = vmatpush1.bf16.msra.mxu0 %v1776_v16 }
  0xc6   : > { %729 = vmatmul.mubr.f32.gmra.mrb[20].mxu0 %v2581_v14  ;;  %990 = vmatmul.mubr.f32.gmra.mrb[18].mxu1 %v2599_v19 }
  0xc7   : > { %1573 = vmatprep.mubr.msk.f32.mxu0 %vm324_vm0, %v2583_v15  ;;  %1612 = vmatprep.mubr.msk.f32.mxu1 %vm324_vm0, %v796_v20 }
  0xc8   : > { %1805 = vmatpush1.bf16.msra.mxu1 %v1776_v16  ;;  %1778 = vmatprep.subr.bf16.mxu0 %v1982_v3 }
  0xc9   : > { %1794 = vmatprep.subr.bf16.mxu1 %v1982_v3  ;;  %1780 = vmatpush1.bf16.msra.mxu0 %v1779_v21 }
  0xca   : > { %734 = vmatmul.mubr.f32.gmra.mrb[22].mxu0 %v2599_v19  ;;  %995 = vmatmul.mubr.f32.gmra.mrb[20].mxu1 %v795_v24 }
  0xcb   : > { %1574 = vmatprep.mubr.msk.f32.mxu0 %vm324_vm0, %v796_v20  ;;  %1613 = vmatprep.mubr.msk.f32.mxu1 %vm324_vm0, %v798_v25 }
  0xcc   : > { %1806 = vmatpush1.bf16.msra.mxu1 %v1779_v21  ;;  %1781 = vmatprep.subr.bf16.mxu0 %v1982_v3 }
  0xcd   : > { %1783 = vmatpush1.bf16.msra.mxu0 %v1782_v26  ;;  %1795 = vmatprep.subr.bf16.mxu1 %v1982_v3  ;;  %v803_v3 = vld [vmem:[#allocation2 + $0x100] sm:$0xff] }
  0xce   : > { %739 = vmatmul.mubr.f32.gmra.mrb[24].mxu0 %v795_v24  ;;  %1000 = vmatmul.mubr.f32.gmra.mrb[22].mxu1 %v797_v28 }
  0xcf   : > { %1575 = vmatprep.mubr.msk.f32.mxu0 %vm324_vm0, %v798_v25  ;;  %1614 = vmatprep.mubr.msk.f32.mxu1 %vm324_vm0, %v800_v29 }
  0xd0   : > { %1807 = vmatpush1.bf16.msra.mxu1 %v1782_v26 }
  0xd2   : > { %744 = vmatmul.mubr.f32.gmra.mrb[26].mxu0 %v797_v28  ;;  %1005 = vmatmul.mubr.f32.gmra.mrb[24].mxu1 %v799_v30 }
  0xd3   : > { %1576 = vmatprep.mubr.msk.f32.mxu0 %vm324_vm0, %v800_v29  ;;  %1615 = vmatprep.mubr.msk.f32.mxu1 %vm324_vm0, %v802_v31 }
  0xd6   : > { %749 = vmatmul.mubr.f32.gmra.mrb[28].mxu0 %v799_v30  ;;  %1010 = vmatmul.mubr.f32.gmra.mrb[26].mxu1 %v801_v33 }
  0xd7   : > { %1577 = vmatprep.mubr.msk.f32.mxu0 %vm324_vm0, %v802_v31  ;;  %1616 = vmatprep.mubr.msk.f32.mxu1 %vm324_vm0, %v804_v34 }
  0xda   : > { %754 = vmatmul.mubr.f32.gmra.mrb[30].mxu0 %v801_v33  ;;  %1015 = vmatmul.mubr.f32.gmra.mrb[28].mxu1 %v803_v3 }
  0xdb   : > { %1617 = vmatprep.mubr.msk.f32.mxu1 %vm324_vm0, %v806_v35  ;;  %1642 = vmatprep.mubr.msk.f32.mxu0 %vm324_vm0, %v2451_v32  ;;  %v1102_v32 = vld [vmem:[#allocation2 + $0x128] sm:$0xff] }
  0xde   : > { %1020 = vmatmul.mubr.f32.gmra.mrb[30].mxu1 %v805_v36  ;;  %1243 = vmatmul.mubr.f32.vlgmr.msra.gmra.mrb[32].mxu0 %v2462_v37  ;;  %v1104_v37 = vld [vmem:[#allocation2 + $0x138] sm:$0xff] }
  0xdf   : > { %1643 = vmatprep.mubr.msk.f32.mxu0 %vm324_vm0, %v2467_v38  ;;  %1650 = vmatprep.mubr.msk.f32.mxu1 %vm324_vm0, %v796_v20  ;;  %v1103_v38 = vld [vmem:[#allocation2 + $0x130] sm:$0xff] }
  0xe2   : > { %1248 = vmatmul.mubr.f32.gmra.mrb[34].mxu0 %v2483_v44  ;;  %1283 = vmatmul.mubr.f32.vlgmr.msra.gmra.mrb[32].mxu1 %v795_v24 }
  0xe3   : > { %1644 = vmatprep.mubr.msk.f32.mxu0 %vm324_vm0, %v2485_v45  ;;  %1651 = vmatprep.mubr.msk.f32.mxu1 %vm324_vm0, %v798_v25 }
  0xe6   : > { %1253 = vmatmul.mubr.f32.gmra.mrb[36].mxu0 %v2503_v51  ;;  %1288 = vmatmul.mubr.f32.gmra.mrb[34].mxu1 %v797_v28 }
  0xe7   : > { %1645 = vmatprep.mubr.msk.f32.mxu0 %vm324_vm0, %v2505_v52  ;;  %1652 = vmatprep.mubr.msk.f32.mxu1 %vm324_vm0, %v800_v29 }
  0xea   : > { %1258 = vmatmul.mubr.f32.gmra.mrb[38].mxu0 %v2523_v58  ;;  %1293 = vmatmul.mubr.f32.gmra.mrb[36].mxu1 %v799_v30 }
  0xeb   : > { %1646 = vmatprep.mubr.msk.f32.mxu0 %vm324_vm0, %v2525_v59  ;;  %1653 = vmatprep.mubr.msk.f32.mxu1 %vm324_vm0, %v802_v31 }
  0xee   : > { %1263 = vmatmul.mubr.f32.gmra.mrb[40].mxu0 %v2543_v1  ;;  %1298 = vmatmul.mubr.f32.gmra.mrb[38].mxu1 %v801_v33 }
  0xef   : > { %1647 = vmatprep.mubr.msk.f32.mxu0 %vm324_vm0, %v2545_v2  ;;  %1654 = vmatprep.mubr.msk.f32.mxu1 %vm324_vm0, %v804_v34 }
  0xf2   : > { %1268 = vmatmul.mubr.f32.gmra.mrb[42].mxu0 %v2563_v9  ;;  %1303 = vmatmul.mubr.f32.gmra.mrb[40].mxu1 %v803_v3 }
  0xf3   : > { %1648 = vmatprep.mubr.msk.f32.mxu0 %vm324_vm0, %v2565_v10  ;;  %1655 = vmatprep.mubr.msk.f32.mxu1 %vm324_vm0, %v806_v35 }
  0xf6   : > { %1273 = vmatmul.mubr.f32.gmra.mrb[44].mxu0 %v2581_v14  ;;  %1308 = vmatmul.mubr.f32.gmra.mrb[42].mxu1 %v805_v36 }
  0xf7   : > { %1649 = vmatprep.mubr.msk.f32.mxu0 %vm324_vm0, %v2583_v15  ;;  %1656 = vmatprep.mubr.msk.f32.mxu1 %vm324_vm0, %v1102_v32 }
  0xfa   : > { %1278 = vmatmul.mubr.f32.gmra.mrb[46].mxu0 %v2599_v19  ;;  %1313 = vmatmul.mubr.f32.gmra.mrb[44].mxu1 %v1101_v27 }
  0xfb   : > { %1657 = vmatprep.mubr.msk.f32.mxu1 %vm324_vm0, %v1104_v37 }
  0xfe   : > { %1318 = vmatmul.mubr.f32.gmra.mrb[46].mxu1 %v1103_v38 }
 0x171   : > { %v680_v39 = vpop.f32.mrb[0].mxu0 }
 0x172   : > { %v682_v40 = vpop.f32.mrb[1].mxu0 }
 0x175   : > { %v685_v41 = vpop.f32.mrb[2].mxu0  ;;  %v946_v42 = vpop.f32.mrb[0].mxu1 }
 0x176   : > { %v2660_v43 = vadd.f32 %v946_v42, %v680_v39  ;;  %v687_v44 = vpop.f32.mrb[3].mxu0  ;;  %v948_v45 = vpop.f32.mrb[1].mxu1 }
 0x179   : > { %v690_v46 = vpop.f32.mrb[4].mxu0  ;;  %v951_v47 = vpop.f32.mrb[2].mxu1 }
 0x17a   : > { %v2662_v48 = vadd.f32 %v951_v47, %v685_v41  ;;  %v692_v49 = vpop.f32.mrb[5].mxu0  ;;  %v953_v50 = vpop.f32.mrb[3].mxu1 }
 0x17d   : > { %v695_v51 = vpop.f32.mrb[6].mxu0  ;;  %v956_v52 = vpop.f32.mrb[4].mxu1 }
 0x17e   : > { %v2664_v53 = vadd.f32 %v956_v52, %v690_v46  ;;  %v697_v54 = vpop.f32.mrb[7].mxu0  ;;  %v958_v55 = vpop.f32.mrb[5].mxu1 }
 0x181   : > { %v700_v56 = vpop.f32.mrb[8].mxu0  ;;  %v961_v57 = vpop.f32.mrb[6].mxu1 }
 0x182   : > { %v2666_v58 = vadd.f32 %v961_v57, %v695_v51  ;;  %v702_v59 = vpop.f32.mrb[9].mxu0  ;;  %v963_v60 = vpop.f32.mrb[7].mxu1  ;;  %v2690_v57 = vld [vmem:[%s2808_s3] ss:$0 sm:$0xff] }
 0x185   : > { %v705_v61 = vpop.f32.mrb[10].mxu0  ;;  %v966_v62 = vpop.f32.mrb[8].mxu1 }
 0x186   : > { %v2668_v63 = vadd.f32 %v966_v62, %v700_v56  ;;  %v707_v0 = vpop.f32.mrb[11].mxu0  ;;  %v968_v1 = vpop.f32.mrb[9].mxu1 }
 0x189   : > { %v710_v2 = vpop.f32.mrb[12].mxu0  ;;  %v971_v4 = vpop.f32.mrb[10].mxu1 }
 0x18a   : > { %v2670_v5 = vadd.f32 %v971_v4, %v705_v61  ;;  %v712_v6 = vpop.f32.mrb[13].mxu0  ;;  %v973_v7 = vpop.f32.mrb[11].mxu1 }
 0x18d   : > { %v715_v8 = vpop.f32.mrb[14].mxu0  ;;  %v976_v9 = vpop.f32.mrb[12].mxu1 }
 0x18e   : > { %v2672_v10 = vadd.f32 %v976_v9, %v710_v2  ;;  %v717_v11 = vpop.f32.mrb[15].mxu0  ;;  %v978_v12 = vpop.f32.mrb[13].mxu1 }
 0x191   : > { %v720_v13 = vpop.f32.mrb[16].mxu0  ;;  %v981_v14 = vpop.f32.mrb[14].mxu1 }
 0x192   : > { %v2674_v15 = vadd.f32 %v981_v14, %v715_v8  ;;  %v722_v16 = vpop.f32.mrb[17].mxu0  ;;  %v983_v17 = vpop.f32.mrb[15].mxu1 }
 0x195   : > { %v725_v18 = vpop.f32.mrb[18].mxu0  ;;  %v986_v19 = vpop.f32.mrb[16].mxu1 }
 0x196   : > { %v1049_v20 = vadd.f32 %v986_v19, %v720_v13  ;;  %v727_v21 = vpop.f32.mrb[19].mxu0  ;;  %v988_v22 = vpop.f32.mrb[17].mxu1 }
 0x199   : > { %v730_v23 = vpop.f32.mrb[20].mxu0  ;;  %v991_v24 = vpop.f32.mrb[18].mxu1 }
 0x19a   : > { %v1050_v25 = vadd.f32 %v991_v24, %v725_v18  ;;  %v732_v26 = vpop.f32.mrb[21].mxu0  ;;  %v993_v28 = vpop.f32.mrb[19].mxu1 }
 0x19d   : > { %v735_v29 = vpop.f32.mrb[22].mxu0  ;;  %v996_v30 = vpop.f32.mrb[20].mxu1 }
 0x19e   : > { %v1051_v31 = vadd.f32 %v996_v30, %v730_v23  ;;  %v737_v33 = vpop.f32.mrb[23].mxu0  ;;  %v998_v34 = vpop.f32.mrb[21].mxu1 }
 0x1a1   : > { %v740_v3 = vpop.f32.mrb[24].mxu0  ;;  %v1001_v35 = vpop.f32.mrb[22].mxu1 }
 0x1a2   : > { %v2676_v36 = vadd.f32 %v1001_v35, %v735_v29  ;;  %v742_v32 = vpop.f32.mrb[25].mxu0  ;;  %v1003_v27 = vpop.f32.mrb[23].mxu1 }
 0x1a5   : > { %v745_v37 = vpop.f32.mrb[26].mxu0  ;;  %v1006_v38 = vpop.f32.mrb[24].mxu1 }
 0x1a6   : > { %v2678_v39 = vadd.f32 %v1006_v38, %v740_v3  ;;  %v747_v40 = vpop.f32.mrb[27].mxu0  ;;  %v1008_v41 = vpop.f32.mrb[25].mxu1 }
 0x1a9   : > { %v750_v42 = vpop.f32.mrb[28].mxu0  ;;  %v1011_v44 = vpop.f32.mrb[26].mxu1 }
 0x1aa   : > { %v2680_v45 = vadd.f32 %v1011_v44, %v745_v37  ;;  %v752_v46 = vpop.f32.mrb[29].mxu0  ;;  %v1013_v47 = vpop.f32.mrb[27].mxu1 }
 0x1ad   : > { %v755_v49 = vpop.f32.mrb[30].mxu0  ;;  %v1016_v50 = vpop.f32.mrb[28].mxu1 }
 0x1ae   : > { %v2683_v51 = vadd.f32 %v1016_v50, %v750_v42  ;;  %v757_v52 = vpop.f32.mrb[31].mxu0  ;;  %v1018_v54 = vpop.f32.mrb[29].mxu1 }
 0x1b1   : > { %v1021_v55 = vpop.f32.mrb[30].mxu1  ;;  %v1244_v56 = vpop.f32.mrb[32].mxu0 }
 0x1b2   : > { %v2692_v59 = vadd.f32 %v1021_v55, %v755_v49  ;;  %v1339_v60 = vadd.f32 %v1244_v56, %v2660_v43  ;;  %v1023_v61 = vpop.f32.mrb[31].mxu1  ;;  %v1246_v62 = vpop.f32.mrb[33].mxu0 }
 0x1b4   : > { %v1394_v0 = vadd.f32 %v2690_v57, %v1339_v60 }
 0x1b5   : > { %v1249_v1 = vpop.f32.mrb[34].mxu0  ;;  %v1284_v2 = vpop.f32.mrb[32].mxu1 }
 0x1b6   : > { %1410 = vst [vmem:[%s2696_s26] sm:$0xff] %v1394_v0  ;;  %v1340_v4 = vadd.f32 %v1249_v1, %v2662_v48  ;;  %v1347_v6 = vadd.f32 %v1284_v2, %v1049_v20  ;;  %v1251_v7 = vpop.f32.mrb[35].mxu0  ;;  %v1286_v8 = vpop.f32.mrb[33].mxu1 }
 0x1b8   : > { %v1395_v43 = vadd.f32 %v2690_v57, %v1340_v4  ;;  %v1402_v9 = vadd.f32 %v2690_v57, %v1347_v6 }
 0x1b9   : > { %v1254_v11 = vpop.f32.mrb[36].mxu0  ;;  %v1289_v12 = vpop.f32.mrb[34].mxu1 }
 0x1ba   : > { %1411 = vst [vmem:[%s2696_s26 + $0x8] sm:$0xff] %v1395_v43  ;;  %1418 = vst [vmem:[%s2696_s26 + $0x40] sm:$0xff] %v1402_v9  ;;  %v1341_v13 = vadd.f32 %v1254_v11, %v2664_v53  ;;  %v1348_v14 = vadd.f32 %v1289_v12, %v1050_v25  ;;  %v1256_v16 = vpop.f32.mrb[37].mxu0  ;;  %v1291_v17 = vpop.f32.mrb[35].mxu1 }
 0x1bc   : > { %v1396_v48 = vadd.f32 %v2690_v57, %v1341_v13  ;;  %v1403_v18 = vadd.f32 %v2690_v57, %v1348_v14 }
 0x1bd   : > { %v1259_v19 = vpop.f32.mrb[38].mxu0  ;;  %v1294_v20 = vpop.f32.mrb[36].mxu1 }
 0x1be   : > { %1412 = vst [vmem:[%s2696_s26 + $0x10] sm:$0xff] %v1396_v48  ;;  %1419 = vst [vmem:[%s2696_s26 + $0x48] sm:$0xff] %v1403_v18  ;;  %v1342_v21 = vadd.f32 %v1259_v19, %v2666_v58  ;;  %v1349_v22 = vadd.f32 %v1294_v20, %v1051_v31  ;;  %v1261_v23 = vpop.f32.mrb[39].mxu0  ;;  %v1296_v24 = vpop.f32.mrb[37].mxu1 }
 0x1c0   : > { %v1397_v53 = vadd.f32 %v2690_v57, %v1342_v21  ;;  %v1404_v25 = vadd.f32 %v2690_v57, %v1349_v22 }
 0x1c1   : > { %v1264_v26 = vpop.f32.mrb[40].mxu0  ;;  %v1299_v28 = vpop.f32.mrb[38].mxu1 }
 0x1c2   : > { %1413 = vst [vmem:[%s2696_s26 + $0x18] sm:$0xff] %v1397_v53  ;;  %1420 = vst [vmem:[%s2696_s26 + $0x50] sm:$0xff] %v1404_v25  ;;  %v1343_v29 = vadd.f32 %v1264_v26, %v2668_v63  ;;  %v1350_v30 = vadd.f32 %v1299_v28, %v2676_v36  ;;  %v1266_v33 = vpop.f32.mrb[41].mxu0  ;;  %v1301_v58 = vpop.f32.mrb[39].mxu1 }
 0x1c4   : > { %v1398_v31 = vadd.f32 %v2690_v57, %v1343_v29  ;;  %v1405_v34 = vadd.f32 %v2690_v57, %v1350_v30 }
 0x1c5   : > { %v1269_v3 = vpop.f32.mrb[42].mxu0  ;;  %v1304_v35 = vpop.f32.mrb[40].mxu1 }
 0x1c6   : > { %1414 = vst [vmem:[%s2696_s26 + $0x20] sm:$0xff] %v1398_v31  ;;  %1421 = vst [vmem:[%s2696_s26 + $0x58] sm:$0xff] %v1405_v34  ;;  %v1344_v32 = vadd.f32 %v1269_v3, %v2670_v5  ;;  %v1351_v63 = vadd.f32 %v1304_v35, %v2678_v39  ;;  %v1271_v27 = vpop.f32.mrb[43].mxu0  ;;  %v1306_v36 = vpop.f32.mrb[41].mxu1 }
 0x1c8   : > { %v1399_v37 = vadd.f32 %v2690_v57, %v1344_v32  ;;  %v1406_v38 = vadd.f32 %v2690_v57, %v1351_v63 }
 0x1c9   : > { %v1274_v40 = vpop.f32.mrb[44].mxu0  ;;  %v1309_v41 = vpop.f32.mrb[42].mxu1 }
 0x1ca   : > { %1415 = vst [vmem:[%s2696_s26 + $0x28] sm:$0xff] %v1399_v37  ;;  %1422 = vst [vmem:[%s2696_s26 + $0x60] sm:$0xff] %v1406_v38  ;;  %v1345_v42 = vadd.f32 %v1274_v40, %v2672_v10  ;;  %v1352_v44 = vadd.f32 %v1309_v41, %v2680_v45  ;;  %v1276_v46 = vpop.f32.mrb[45].mxu0  ;;  %v1311_v5 = vpop.f32.mrb[43].mxu1 }
 0x1cc   : > { %v1400_v39 = vadd.f32 %v2690_v57, %v1345_v42  ;;  %v1407_v47 = vadd.f32 %v2690_v57, %v1352_v44 }
 0x1cd   : > { %v1279_v49 = vpop.f32.mrb[46].mxu0  ;;  %v1314_v50 = vpop.f32.mrb[44].mxu1 }
 0x1ce   : > { %1416 = vst [vmem:[%s2696_s26 + $0x30] sm:$0xff] %v1400_v39  ;;  %1423 = vst [vmem:[%s2696_s26 + $0x68] sm:$0xff] %v1407_v47  ;;  %v1346_v10 = vadd.f32 %v1279_v49, %v2674_v15  ;;  %v1353_v45 = vadd.f32 %v1314_v50, %v2683_v51  ;;  %v1281_v52 = vpop.f32.mrb[47].mxu0  ;;  %v1316_v54 = vpop.f32.mrb[45].mxu1 }
 0x1d0   : > { %v1401_v55 = vadd.f32 %v2690_v57, %v1346_v10  ;;  %v1408_v56 = vadd.f32 %v2690_v57, %v1353_v45 }
 0x1d1   : > { %v1319_v60 = vpop.f32.mrb[46].mxu1 }
 0x1d2   : > { %1417 = vst [vmem:[%s2696_s26 + $0x38] sm:$0xff] %v1401_v55  ;;  %1424 = vst [vmem:[%s2696_s26 + $0x70] sm:$0xff] %v1408_v56  ;;  %v1354_v61 = vadd.f32 %v1319_v60, %v2692_v59  ;;  %v1321_v62 = vpop.f32.mrb[47].mxu1 }
 0x1d4   : > { %v1409_v15 = vadd.f32 %v2690_v57, %v1354_v61 }
 0x1d6   : > { %1425 = vst [vmem:[%s2696_s26 + $0x78] sm:$0xff] %v1409_v15 }
 0x1d7   : > { %1899 = shalt.err (!%p1896_p9)
}
 0x1d8   : > { %s1900_s8 = scalar_lea.hbm %s2745_s5, 2048  ;;  %s1904_s30 = scalar_lea.hbm %s2809_s4, 8192 }
 0x1d9   : > { %p1901_p10 = scmp.ne.s32.totalorder %s2745_s5, %s1900_s8  ;;  %p1905_p13 = scmp.lt.u32.totalorder %s2745_s5, %s2809_s4 }
 0x1da   : > { %p1906_p0 = scmp.lt.u32.totalorder %s1904_s30, %s1900_s8  ;;  %p1908_p2 = scmp.lt.u32.totalorder %s1900_s8, %s2745_s5 }
 0x1db   : > { %p1902_p11 = pnand %p1901_p10, %p2063_p3 }
 0x1dc   : > { %p1907_p1 = por %p1906_p0, %p1905_p13 }
 0x1dd   : > { %p1903_p12 = pneg %p1902_p11 }
 0x1de   : > { %p1909_p4 = por %p1908_p2, %p1907_p1 }
 0x1e0   : > { %p1910_p5 = pnand %p1909_p4, %p1903_p12 }
 0x1e2   : > { %1913 = shalt.err (!%p1910_p5)
}
 0x1e3   : > { %s1985_s18 = smov 128   ;;  %s1986_s10 = smov 8  }
 0x1e4   : > { %1811 = dma.vmem_to_hbm [thread:$0]  (%p2063_p3), %s2747_s19, 2048, %s2745_s5, %s2753_s11, %s1985_s18, %s1985_s18, %s1986_s10  }
 0x1e5 PF: > { %p1817_p6 = scmp.ge.s32.totalorder %s1980_s22, 2  ;;  %s1458_s24 = sand.u32 1, %s1952_s15  }
 0x1e6   : > { %s1459_s13 = scalar_lea.sflag [#allocation5], %s1458_s24 }
 0x1e7   : > { %p1814_p7 = pnand %p1817_p6, %p2072_p8 }
 0x1e9   : > { %1947 = dma.done.wait (!%p1814_p7), %s1459_s13, 2048  }
 0x1ea   : > { %1949 = vsyncadd (!%p1814_p7), %s1459_s13, 4294965248  ;;  %s17_s22 = sadd.s32 1, %s1980_s22   ;;  %s2815_s28 = sld [smem:[#allocation7_spill]] }
 0x1eb   : > { %p14_p9 = scmp.ge.s32.totalorder %s17_s22, 6   ;;  %s2816_s15 = smov %s1956_s16 }
 0x1ec   : > { %s2817_s16 = smov %s1960_s17  ;;  %s2818_s17 = smov %s2081_s7 }
 0x1ed   : > { %s2819_s18 = smov %s1972_s20  ;;  %s2820_s19 = smov %s1976_s21 }
 0x1ee   : > { %s2821_s20 = smov %s2824_s25  ;;  %16 = sbr.rel (!%p14_p9) target bundleno = 5 (0x5), region = 76 }
 0x1f0   : > { %s2822_s21 = smov %s2815_s28 }
 0x1f5   :  { %1464 = vsyncpa [#allocation5], 1 }
 0x1f6   :  { %1466 = vsyncpa [#allocation5 + $0x1], 1 }

</bundles_post_ra>
